<compile_context>
chip_gen: v6e
topology: v6e:2x2x1
jax: 0.10.0
libtpu: 0.0.40
codegen_flags: <defaults>
</compile_context>

<pallas_src>
import functools

import jax
import jax.numpy as jnp
from jax import lax
from jax.experimental import pallas as pl
from jax.experimental.pallas import tpu as pltpu

EPS = 1e-5  # nn.InstanceNorm2d default eps


def _round_up(v, m):
    return -(-v // m) * m


def _conv_in_relu_kernel(x_ref, w_ref, p_ref, o_ref, acc_ref, *,
                         k, stride, Ho, Wo, Hq, R):
    """One (sample, channel-block): conv + InstanceNorm(affine) + ReLU.

    x_ref  : (1, s*s*Hq, Wq, C_in)  reflect-padded, stride-phase-split input (bf16)
    w_ref  : (k, c_blk, k*C_in)     weight, row-tap major, width taps folded
                                    into the contraction (bf16)
    p_ref  : (c_blk, 2)             [gamma, beta] (f32; zero-padded channels -> 0)
    o_ref  : (1, c_blk, Ho*Wo)      lane-dense output (bf16 by default)
    acc_ref: (c_blk, Ho*Wo) f32     un-normalized conv output scratch
    """
    c_blk = o_ref.shape[1]
    c_in = x_ref.shape[-1]
    HWo = Ho * Wo
    CH = R * Wo                      # lanes per spatial chunk (R | Ho)
    n_chunks = HWo // CH
    s = stride

    # ---- pass 1: convolution.  Per chunk: k matmuls (K = k*C_in), all taps
    # accumulated in registers, a single store to the f32 scratch.
    def conv_chunk(ci, row_sum):
        r0 = pl.multiple_of(ci * R, R)
        col0 = pl.multiple_of(ci * CH, CH)
        chunk = jnp.zeros((c_blk, CH), jnp.float32)
        for di in range(k):
            parts = []
            for dj in range(k):
                # stride-phase plane holding rows/cols congruent to (di%s, dj%s)
                plane = (di % s) * s + (dj % s)
                row0 = plane * Hq + di // s
                parts.append(
                    x_ref[0, pl.ds(row0 + r0, R),
                          dj // s: dj // s + Wo, :])       # (R, Wo, C_in)
            op = jnp.concatenate(parts, axis=-1).reshape(CH, k * c_in)
            chunk = chunk + lax.dot_general(
                w_ref[di], op,
                dimension_numbers=(((1,), (1,)), ((), ())),
                preferred_element_type=jnp.float32)        # (c_blk, CH)
        acc_ref[:, pl.ds(col0, CH)] = chunk
        return row_sum + jnp.sum(chunk, axis=1, keepdims=True)

    total = lax.fori_loop(0, n_chunks, conv_chunk,
                          jnp.zeros((c_blk, 1), jnp.float32))
    mean = total * (1.0 / HWo)

    # ---- pass 2: two-pass (cancellation-safe) biased variance.
    def var_chunk(ci, ssq):
        col0 = pl.multiple_of(ci * CH, CH)
        d = acc_ref[:, pl.ds(col0, CH)] - mean
        return ssq + jnp.sum(d * d, axis=1, keepdims=True)

    var = lax.fori_loop(0, n_chunks, var_chunk,
                        jnp.zeros((c_blk, 1), jnp.float32)) * (1.0 / HWo)

    # ---- pass 3: fused affine + ReLU, bf16 writeback.
    # The conv bias cancels exactly against the mean subtraction, so it is
    # never applied.  Zero-padded gamma kills the rsqrt(eps) blow-up of
    # zero-variance padded channels (a = 0), keeping them at exactly 0.
    inv = lax.rsqrt(var + EPS)
    a = p_ref[:, 0:1] * inv                  # gamma * rsqrt(var + eps)
    c = p_ref[:, 1:2] - mean * a             # beta  - mean * a

    def out_chunk(ci, carry):
        col0 = pl.multiple_of(ci * CH, CH)
        chunk = acc_ref[:, pl.ds(col0, CH)]
        o_ref[0, :, pl.ds(col0, CH)] = jnp.maximum(
            chunk * a + c, 0.0).astype(o_ref.dtype)
        return carry

    lax.fori_loop(0, n_chunks, out_chunk, 0)


def _vmem_capacity_bytes():
    try:
        info = pltpu.get_tpu_info()
        for attr in ("vmem_capacity_bytes", "vmem_size_bytes", "vmem_bytes"):
            v = getattr(info, attr, None)
            if v:
                return int(v)
    except Exception:
        pass
    return 64 << 20  # conservative fallback: v7x per-TensorCore VMEM


def _block_vmem_bytes(s2, Hq, Wq, C_in, k, c_blk, HWo):
    """Exact VMEM footprint incl. (sublane, lane) tile padding; in/out blocks
    are double-buffered by the pipeline, the accumulator is plain scratch."""
    x_blk = s2 * Hq * _round_up(Wq, 16) * _round_up(C_in, 128) * 2
    w_blk = k * _round_up(c_blk, 16) * _round_up(k * C_in, 128) * 2
    p_blk = _round_up(c_blk, 8) * 128 * 4
    o_blk = _round_up(c_blk, 16) * _round_up(HWo, 128) * 2
    acc = _round_up(c_blk, 8) * _round_up(HWo, 128) * 4
    return 2 * (x_blk + w_blk + p_blk + o_blk) + acc


@functools.partial(jax.jit,
                   static_argnames=("kernel_size", "stride", "out_dtype"))
def conv_layer_forward(x, weight, bias, gamma, beta, *, kernel_size, stride,
                       out_dtype=jnp.bfloat16):
    """ConvLayer forward.  x: (N, C_in, H, W), weight: (C_out, C_in, k, k).
    Returns (N, C_out, Ho, Wo) in `out_dtype` (bf16 by default to halve the
    HBM writeback).  The conv bias is cancelled by instance norm and unused."""
    del bias
    k = kernel_size
    s = stride
    pad = k // 2
    N, C_in, H, W = x.shape
    C_out = weight.shape[0]
    Hp, Wp = H + 2 * pad, W + 2 * pad
    Ho = (Hp - k) // s + 1
    Wo = (Wp - k) // s + 1
    HWo = Ho * Wo
    s2 = s * s
    Hq = -(-Hp // s)
    Wq = -(-Wp // s)

    # Reflection pad, NCHW -> NHWC, stride-phase (space-to-depth) split so the
    # kernel only takes contiguous slices, bf16 MXU operands.
    # TODO(synk): keep activations NHWC/bf16 end-to-end across layers and do
    # the reflection halo inside the kernel to remove this extra HBM pass.
    x_p = jnp.pad(x, ((0, 0), (0, 0), (pad, pad), (pad, pad)), mode="reflect")
    x_nhwc = jnp.transpose(x_p, (0, 2, 3, 1))
    x_nhwc = jnp.pad(x_nhwc,
                     ((0, 0), (0, Hq * s - Hp), (0, Wq * s - Wp), (0, 0)))
    x_ph = (x_nhwc.reshape(N, Hq, s, Wq, s, C_in)
            .transpose(0, 2, 4, 1, 3, 5)
            .reshape(N, s2 * Hq, Wq, C_in)
            .astype(jnp.bfloat16))
    # TODO(synk): specialize the small-C_in first layer (C_in < 32) with a
    # VMEM im2col layout to avoid the C_in->128 lane padding waste.

    # Channel blocking (sublane aligned; >=2 grid units for v7x's 2 TCs).
    vmem_cap = _vmem_capacity_bytes()
    Cp = _round_up(C_out, 8)
    if Cp <= 128:
        c_blk = Cp
        if N == 1 and Cp >= 32:                 # single-image inference split
            c_blk = _round_up(Cp // 2, 16)
            Cp = _round_up(Cp, c_blk)
    else:
        c_blk = 256 if (C_out >= 256 and vmem_cap >= (100 << 20)) else 128
        Cp = _round_up(Cp, c_blk)

    # Exact, generation-aware VMEM budget with a channel-block fallback.
    cap = int(0.9 * vmem_cap)
    need = _block_vmem_bytes(s2, Hq, Wq, C_in, k, c_blk, HWo)
    while need > cap and c_blk > 16:
        c_blk = max(16, _round_up(c_blk // 2, 16))
        Cp = _round_up(C_out, c_blk)
        need = _block_vmem_bytes(s2, Hq, Wq, C_in, k, c_blk, HWo)
    # TODO(synk): spatial row-band tiling (two-pass instance norm) for images
    # where the padded sample / accumulator cannot be VMEM-resident.
    vmem_limit = int(min(max(need + (2 << 20), 16 << 20), cap))
    n_cb = Cp // c_blk

    # Weight: (C_out, C_in, kh, kw) -> (kh, Cp, kw*C_in); width taps folded
    # into the contraction so the MXU sees K = k*C_in.
    w_r = jnp.transpose(weight, (2, 0, 3, 1)).reshape(k, C_out, k * C_in)
    w_r = jnp.pad(w_r, ((0, 0), (0, Cp - C_out), (0, 0))).astype(jnp.bfloat16)

    # Per-channel [gamma, beta]; zero padding keeps padded channels at 0.
    params = jnp.stack([gamma, beta], axis=1).astype(jnp.float32)
    params = jnp.pad(params, ((0, Cp - C_out), (0, 0)))

    # Spatial chunking: R output rows per chunk (R divides Ho), ~512 lanes.
    if Wo >= 512:
        R = 1
    else:
        R = max(1, min(Ho, 512 // Wo))
        while Ho % R:
            R -= 1

    kernel = functools.partial(_conv_in_relu_kernel, k=k, stride=s,
                               Ho=Ho, Wo=Wo, Hq=Hq, R=R)
    out_flat = pl.pallas_call(
        kernel,
        out_shape=jax.ShapeDtypeStruct((N, Cp, HWo), out_dtype),
        grid_spec=pltpu.PrefetchScalarGridSpec(
            num_scalar_prefetch=0,
            grid=(N, n_cb),
            in_specs=[
                pl.BlockSpec((1, s2 * Hq, Wq, C_in),
                             lambda n, c: (n, 0, 0, 0)),
                pl.BlockSpec((k, c_blk, k * C_in), lambda n, c: (0, c, 0)),
                pl.BlockSpec((c_blk, 2), lambda n, c: (c, 0)),
            ],
            out_specs=pl.BlockSpec((1, c_blk, HWo), lambda n, c: (n, c, 0)),
            scratch_shapes=[pltpu.VMEM((c_blk, HWo), jnp.float32)],
        ),
        compiler_params=pltpu.CompilerParams(
            dimension_semantics=("parallel", "parallel"),
            vmem_limit_bytes=vmem_limit),
    )(x_ph, w_r, params)

    # (N, Cp, Ho*Wo) -> (N, C_out, Ho, Wo): slice + free reshape, no transpose.
    return out_flat[:, :C_out, :].reshape(N, C_out, Ho, Wo)


def _reference_forward(x, weight, bias, gamma, beta, kernel_size, stride,
                       round_to_bf16=False):
    pad = kernel_size // 2
    xp = jnp.pad(x, ((0, 0), (0, 0), (pad, pad), (pad, pad)), mode="reflect")
    w = weight
    if round_to_bf16:  # mimic the kernel's bf16 MXU operands (f32 accumulate)
        xp = xp.astype(jnp.bfloat16).astype(jnp.float32)
        w = w.astype(jnp.bfloat16).astype(jnp.float32)
    y = lax.conv_general_dilated(
        xp, w, window_strides=(stride, stride), padding="VALID",
        dimension_numbers=("NCHW", "OIHW", "NCHW"))
    y = y + bias[None, :, None, None]
    mean = y.mean(axis=(2, 3), keepdims=True)
    var = y.var(axis=(2, 3), keepdims=True)
    y_hat = (y - mean) / jnp.sqrt(var + EPS)
    y_hat = y_hat * gamma[None, :, None, None] + beta[None, :, None, None]
    return jnp.maximum(y_hat, 0.0)


def _run_case(N, C_in, H, W, C_out, k, stride, key):
    kx, kw, kb, kg, kbe = jax.random.split(key, 5)
    x = jax.random.normal(kx, (N, C_in, H, W), dtype=jnp.float32)
    weight = jax.random.normal(kw, (C_out, C_in, k, k), jnp.float32) * 0.1
    bias = jax.random.normal(kb, (C_out,), jnp.float32) * 0.1
    gamma = 1.0 + 0.1 * jax.random.normal(kg, (C_out,), jnp.float32)
    beta = 0.1 * jax.random.normal(kbe, (C_out,), jnp.float32)

    out = conv_layer_forward(x, weight, bias, gamma, beta,
                             kernel_size=k, stride=stride)
    out = jax.block_until_ready(out)
    pad = k // 2
    Ho = (H + 2 * pad - k) // stride + 1
    Wo = (W + 2 * pad - k) // stride + 1
    assert out.shape == (N, C_out, Ho, Wo), out.shape
    out32 = out.astype(jnp.float32)

    # Tight check vs a reference whose conv operands are bf16-rounded (the
    # kernel's MXU dtype); epilogue is f32 in both, kernel output is bf16.
    ref_bf16 = _reference_forward(x, weight, bias, gamma, beta, k, stride,
                                  round_to_bf16=True)
    err = float(jnp.max(jnp.abs(out32 - ref_bf16)))
    assert jnp.allclose(out32, ref_bf16, atol=3e-2, rtol=3e-2), err

    # Loose sanity check vs the full-f32 PyTorch-equivalent reference.
    ref_f32 = _reference_forward(x, weight, bias, gamma, beta, k, stride)
    err32 = float(jnp.max(jnp.abs(out32 - ref_f32)))
    assert jnp.allclose(out32, ref_f32, atol=1.5e-1, rtol=1.5e-1), err32


if __name__ == "__main__":
    # stride=1 layer (batch of 2), small shapes consistent with the module.
    _run_case(N=2, C_in=4, H=16, W=16, C_out=8, k=3, stride=1,
              key=jax.random.PRNGKey(0))
    # stride=2 downsampling layer, single image (exercises the stride-phase
    # path and the 2-way channel split for v7x's two TensorCores).
    _run_case(N=1, C_in=8, H=16, W=16, C_out=32, k=3, stride=2,
              key=jax.random.PRNGKey(1))
    print("KERNEL_OK")
</pallas_src>

<mosaic_0001>
module attributes {stable_mosaic.version = 11 : i64} {
  func.func @_conv_in_relu_kernel(%arg0: i32, %arg1: i32, %arg2: memref<1x18x18x4xbf16, #tpu.memory_space<vmem>>, %arg3: memref<3x8x12xbf16, #tpu.memory_space<vmem>>, %arg4: memref<8x2xf32, #tpu.memory_space<vmem>>, %arg5: memref<1x8x256xbf16, #tpu.memory_space<vmem>>, %arg6: memref<8x256xf32, #tpu.memory_space<vmem>>) attributes {dimension_semantics = [#tpu.dimension_semantics<parallel>, #tpu.dimension_semantics<parallel>], iteration_bounds = array<i64: 2, 1>, scalar_prefetch = 0 : i64, scratch_operands = 1 : i64, tpu.core_type = #tpu.core_type<tc>, window_params = [{transform_indices = @transform_0, window_bounds = array<i64: 1, 18, 18, 4>}, {transform_indices = @transform_1, window_bounds = array<i64: 3, 8, 12>}, {transform_indices = @transform_2, window_bounds = array<i64: 8, 2>}, {transform_indices = @transform_3, window_bounds = array<i64: 1, 8, 256>}]} {
    %cst = arith.constant 0.000000e+00 : f32
    %0 = vector.broadcast %cst : f32 to vector<8x1xf32>
    %c0_i32 = arith.constant 0 : i32
    %c16_i32 = arith.constant 16 : i32
    %1 = arith.muli %c0_i32, %c16_i32 : i32
    %2 = tpu.assume_multiple %1, 16 : i32
    %c256_i32 = arith.constant 256 : i32
    %3 = arith.muli %c0_i32, %c256_i32 : i32
    %4 = tpu.assume_multiple %3, 256 : i32
    %cst_0 = arith.constant 0.000000e+00 : f32
    %5 = vector.broadcast %cst_0 : f32 to vector<8x256xf32>
    %c0_i32_1 = arith.constant 0 : i32
    %6 = arith.addi %c0_i32_1, %2 : i32
    %c0 = arith.constant 0 : index
    %7 = arith.index_cast %6 : i32 to index
    %c0_2 = arith.constant 0 : index
    %c0_3 = arith.constant 0 : index
    %8 = vector.load %arg2[%c0, %7, %c0_2, %c0_3] : memref<1x18x18x4xbf16, #tpu.memory_space<vmem>>, vector<1x16x16x4xbf16>
    %9 = vector.shape_cast %8 : vector<1x16x16x4xbf16> to vector<16x16x4xbf16>
    %c0_i32_4 = arith.constant 0 : i32
    %10 = arith.addi %c0_i32_4, %2 : i32
    %c0_5 = arith.constant 0 : index
    %11 = arith.index_cast %10 : i32 to index
    %c1 = arith.constant 1 : index
    %c0_6 = arith.constant 0 : index
    %12 = vector.load %arg2[%c0_5, %11, %c1, %c0_6] : memref<1x18x18x4xbf16, #tpu.memory_space<vmem>>, vector<1x16x16x4xbf16>
    %13 = vector.shape_cast %12 : vector<1x16x16x4xbf16> to vector<16x16x4xbf16>
    %c0_i32_7 = arith.constant 0 : i32
    %14 = arith.addi %c0_i32_7, %2 : i32
    %c0_8 = arith.constant 0 : index
    %15 = arith.index_cast %14 : i32 to index
    %c2 = arith.constant 2 : index
    %c0_9 = arith.constant 0 : index
    %16 = vector.load %arg2[%c0_8, %15, %c2, %c0_9] : memref<1x18x18x4xbf16, #tpu.memory_space<vmem>>, vector<1x16x16x4xbf16>
    %17 = vector.shape_cast %16 : vector<1x16x16x4xbf16> to vector<16x16x4xbf16>
    %18 = tpu.concatenate %9, %13, %17 in 2 : vector<16x16x4xbf16>, vector<16x16x4xbf16>, vector<16x16x4xbf16> -> vector<16x16x12xbf16>
    %19 = vector.shape_cast %18 : vector<16x16x12xbf16> to vector<256x12xbf16>
    %c0_10 = arith.constant 0 : index
    %c0_11 = arith.constant 0 : index
    %c0_12 = arith.constant 0 : index
    %20 = vector.load %arg3[%c0_10, %c0_11, %c0_12] : memref<3x8x12xbf16, #tpu.memory_space<vmem>>, vector<1x8x12xbf16>
    %21 = vector.shape_cast %20 : vector<1x8x12xbf16> to vector<8x12xbf16>
    %cst_13 = arith.constant dense<0.000000e+00> : vector<8x256xf32>
    %22 = tpu.matmul %21, %19, %cst_13 {dimension_numbers = #tpu.dot_dimension_numbers<[1], [1], [0], [0], [0, 0, 1, 0], [], []>} : vector<8x12xbf16>, vector<256x12xbf16>, vector<8x256xf32> -> vector<8x256xf32>
    %23 = arith.addf %5, %22 : vector<8x256xf32>
    %c1_i32 = arith.constant 1 : i32
    %24 = arith.addi %c1_i32, %2 : i32
    %c0_14 = arith.constant 0 : index
    %25 = arith.index_cast %24 : i32 to index
    %c0_15 = arith.constant 0 : index
    %c0_16 = arith.constant 0 : index
    %26 = vector.load %arg2[%c0_14, %25, %c0_15, %c0_16] : memref<1x18x18x4xbf16, #tpu.memory_space<vmem>>, vector<1x16x16x4xbf16>
    %27 = vector.shape_cast %26 : vector<1x16x16x4xbf16> to vector<16x16x4xbf16>
    %c1_i32_17 = arith.constant 1 : i32
    %28 = arith.addi %c1_i32_17, %2 : i32
    %c0_18 = arith.constant 0 : index
    %29 = arith.index_cast %28 : i32 to index
    %c1_19 = arith.constant 1 : index
    %c0_20 = arith.constant 0 : index
    %30 = vector.load %arg2[%c0_18, %29, %c1_19, %c0_20] : memref<1x18x18x4xbf16, #tpu.memory_space<vmem>>, vector<1x16x16x4xbf16>
    %31 = vector.shape_cast %30 : vector<1x16x16x4xbf16> to vector<16x16x4xbf16>
    %c1_i32_21 = arith.constant 1 : i32
    %32 = arith.addi %c1_i32_21, %2 : i32
    %c0_22 = arith.constant 0 : index
    %33 = arith.index_cast %32 : i32 to index
    %c2_23 = arith.constant 2 : index
    %c0_24 = arith.constant 0 : index
    %34 = vector.load %arg2[%c0_22, %33, %c2_23, %c0_24] : memref<1x18x18x4xbf16, #tpu.memory_space<vmem>>, vector<1x16x16x4xbf16>
    %35 = vector.shape_cast %34 : vector<1x16x16x4xbf16> to vector<16x16x4xbf16>
    %36 = tpu.concatenate %27, %31, %35 in 2 : vector<16x16x4xbf16>, vector<16x16x4xbf16>, vector<16x16x4xbf16> -> vector<16x16x12xbf16>
    %37 = vector.shape_cast %36 : vector<16x16x12xbf16> to vector<256x12xbf16>
    %c1_25 = arith.constant 1 : index
    %c0_26 = arith.constant 0 : index
    %c0_27 = arith.constant 0 : index
    %38 = vector.load %arg3[%c1_25, %c0_26, %c0_27] : memref<3x8x12xbf16, #tpu.memory_space<vmem>>, vector<1x8x12xbf16>
    %39 = vector.shape_cast %38 : vector<1x8x12xbf16> to vector<8x12xbf16>
    %cst_28 = arith.constant dense<0.000000e+00> : vector<8x256xf32>
    %40 = tpu.matmul %39, %37, %cst_28 {dimension_numbers = #tpu.dot_dimension_numbers<[1], [1], [0], [0], [0, 0, 1, 0], [], []>} : vector<8x12xbf16>, vector<256x12xbf16>, vector<8x256xf32> -> vector<8x256xf32>
    %41 = arith.addf %23, %40 : vector<8x256xf32>
    %c2_i32 = arith.constant 2 : i32
    %42 = arith.addi %c2_i32, %2 : i32
    %c0_29 = arith.constant 0 : index
    %43 = arith.index_cast %42 : i32 to index
    %c0_30 = arith.constant 0 : index
    %c0_31 = arith.constant 0 : index
    %44 = vector.load %arg2[%c0_29, %43, %c0_30, %c0_31] : memref<1x18x18x4xbf16, #tpu.memory_space<vmem>>, vector<1x16x16x4xbf16>
    %45 = vector.shape_cast %44 : vector<1x16x16x4xbf16> to vector<16x16x4xbf16>
    %c2_i32_32 = arith.constant 2 : i32
    %46 = arith.addi %c2_i32_32, %2 : i32
    %c0_33 = arith.constant 0 : index
    %47 = arith.index_cast %46 : i32 to index
    %c1_34 = arith.constant 1 : index
    %c0_35 = arith.constant 0 : index
    %48 = vector.load %arg2[%c0_33, %47, %c1_34, %c0_35] : memref<1x18x18x4xbf16, #tpu.memory_space<vmem>>, vector<1x16x16x4xbf16>
    %49 = vector.shape_cast %48 : vector<1x16x16x4xbf16> to vector<16x16x4xbf16>
    %c2_i32_36 = arith.constant 2 : i32
    %50 = arith.addi %c2_i32_36, %2 : i32
    %c0_37 = arith.constant 0 : index
    %51 = arith.index_cast %50 : i32 to index
    %c2_38 = arith.constant 2 : index
    %c0_39 = arith.constant 0 : index
    %52 = vector.load %arg2[%c0_37, %51, %c2_38, %c0_39] : memref<1x18x18x4xbf16, #tpu.memory_space<vmem>>, vector<1x16x16x4xbf16>
    %53 = vector.shape_cast %52 : vector<1x16x16x4xbf16> to vector<16x16x4xbf16>
    %54 = tpu.concatenate %45, %49, %53 in 2 : vector<16x16x4xbf16>, vector<16x16x4xbf16>, vector<16x16x4xbf16> -> vector<16x16x12xbf16>
    %55 = vector.shape_cast %54 : vector<16x16x12xbf16> to vector<256x12xbf16>
    %c2_40 = arith.constant 2 : index
    %c0_41 = arith.constant 0 : index
    %c0_42 = arith.constant 0 : index
    %56 = vector.load %arg3[%c2_40, %c0_41, %c0_42] : memref<3x8x12xbf16, #tpu.memory_space<vmem>>, vector<1x8x12xbf16>
    %57 = vector.shape_cast %56 : vector<1x8x12xbf16> to vector<8x12xbf16>
    %cst_43 = arith.constant dense<0.000000e+00> : vector<8x256xf32>
    %58 = tpu.matmul %57, %55, %cst_43 {dimension_numbers = #tpu.dot_dimension_numbers<[1], [1], [0], [0], [0, 0, 1, 0], [], []>} : vector<8x12xbf16>, vector<256x12xbf16>, vector<8x256xf32> -> vector<8x256xf32>
    %59 = arith.addf %41, %58 : vector<8x256xf32>
    %c0_44 = arith.constant 0 : index
    %60 = arith.index_cast %4 : i32 to index
    %61 = vector.load %arg6[%c0_44, %60] : memref<8x256xf32, #tpu.memory_space<vmem>>, vector<8x256xf32>
    tpu.vector_store %arg6[%c0_44, %60], %59 {strides = array<i32>} : memref<8x256xf32, #tpu.memory_space<vmem>>, vector<8x256xf32>,
    %cst_45 = arith.constant dense<0.000000e+00> : vector<8xf32>
    %62 = vector.multi_reduction <add>, %59, %cst_45 [1] : vector<8x256xf32> to vector<8xf32>
    %63 = vector.shape_cast %62 : vector<8xf32> to vector<8x1xf32>
    %64 = arith.addf %0, %63 : vector<8x1xf32>
    %c1_i32_46 = arith.constant 1 : i32
    %cst_47 = arith.constant 3.906250e-03 : f32
    %65 = vector.broadcast %cst_47 : f32 to vector<8x1xf32>
    %66 = arith.mulf %64, %65 : vector<8x1xf32>
    %cst_48 = arith.constant 0.000000e+00 : f32
    %67 = vector.broadcast %cst_48 : f32 to vector<8x1xf32>
    %c0_i32_49 = arith.constant 0 : i32
    %c256_i32_50 = arith.constant 256 : i32
    %68 = arith.muli %c0_i32_49, %c256_i32_50 : i32
    %69 = tpu.assume_multiple %68, 256 : i32
    %c0_51 = arith.constant 0 : index
    %70 = arith.index_cast %69 : i32 to index
    %71 = vector.load %arg6[%c0_51, %70] : memref<8x256xf32, #tpu.memory_space<vmem>>, vector<8x256xf32>
    %72 = vector.broadcast %66 : vector<8x1xf32> to vector<8x256xf32>
    %73 = arith.subf %71, %72 : vector<8x256xf32>
    %74 = arith.mulf %73, %73 : vector<8x256xf32>
    %cst_52 = arith.constant dense<0.000000e+00> : vector<8xf32>
    %75 = vector.multi_reduction <add>, %74, %cst_52 [1] : vector<8x256xf32> to vector<8xf32>
    %76 = vector.shape_cast %75 : vector<8xf32> to vector<8x1xf32>
    %77 = arith.addf %67, %76 : vector<8x1xf32>
    %c1_i32_53 = arith.constant 1 : i32
    %cst_54 = arith.constant 3.906250e-03 : f32
    %78 = vector.broadcast %cst_54 : f32 to vector<8x1xf32>
    %79 = arith.mulf %77, %78 : vector<8x1xf32>
    %cst_55 = arith.constant 9.99999974E-6 : f32
    %80 = vector.broadcast %cst_55 : f32 to vector<8x1xf32>
    %81 = arith.addf %79, %80 : vector<8x1xf32>
    %82 = math.rsqrt %81 : vector<8x1xf32>
    %c0_56 = arith.constant 0 : index
    %c0_57 = arith.constant 0 : index
    %83 = vector.load %arg4[%c0_56, %c0_57] : memref<8x2xf32, #tpu.memory_space<vmem>>, vector<8x1xf32>
    %84 = arith.mulf %83, %82 : vector<8x1xf32>
    %c0_58 = arith.constant 0 : index
    %c1_59 = arith.constant 1 : index
    %85 = vector.load %arg4[%c0_58, %c1_59] : memref<8x2xf32, #tpu.memory_space<vmem>>, vector<8x1xf32>
    %86 = arith.mulf %66, %84 : vector<8x1xf32>
    %87 = arith.subf %85, %86 : vector<8x1xf32>
    %c0_i32_60 = arith.constant 0 : i32
    %c256_i32_61 = arith.constant 256 : i32
    %88 = arith.muli %c0_i32_60, %c256_i32_61 : i32
    %89 = tpu.assume_multiple %88, 256 : i32
    %c0_62 = arith.constant 0 : index
    %90 = arith.index_cast %89 : i32 to index
    %91 = vector.load %arg6[%c0_62, %90] : memref<8x256xf32, #tpu.memory_space<vmem>>, vector<8x256xf32>
    %92 = vector.broadcast %84 : vector<8x1xf32> to vector<8x256xf32>
    %93 = arith.mulf %91, %92 : vector<8x256xf32>
    %94 = vector.broadcast %87 : vector<8x1xf32> to vector<8x256xf32>
    %95 = arith.addf %93, %94 : vector<8x256xf32>
    %cst_63 = arith.constant 0.000000e+00 : f32
    %96 = vector.broadcast %cst_63 : f32 to vector<8x256xf32>
    %97 = arith.maximumf %95, %96 : vector<8x256xf32>
    %98 = arith.truncf %97 : vector<8x256xf32> to vector<8x256xbf16>
    %c0_64 = arith.constant 0 : index
    %c0_65 = arith.constant 0 : index
    %99 = arith.index_cast %89 : i32 to index
    %100 = vector.load %arg5[%c0_64, %c0_65, %99] : memref<1x8x256xbf16, #tpu.memory_space<vmem>>, vector<1x8x256xbf16>
    %101 = vector.shape_cast %100 : vector<1x8x256xbf16> to vector<8x256xbf16>
    %102 = vector.shape_cast %98 : vector<8x256xbf16> to vector<1x8x256xbf16>
    tpu.vector_store %arg5[%c0_64, %c0_65, %99], %102 {strides = array<i32>} : memref<1x8x256xbf16, #tpu.memory_space<vmem>>, vector<1x8x256xbf16>,
    %c1_i32_66 = arith.constant 1 : i32
    return
  }
  func.func @transform_0(%arg0: i32, %arg1: i32) -> (i32, i32, i32, i32) {
    %c0_i32 = arith.constant 0 : i32
    %c0_i32_0 = arith.constant 0 : i32
    %c0_i32_1 = arith.constant 0 : i32
    %c0_i32_2 = arith.constant 0 : i32
    return %arg0, %c0_i32, %c0_i32_0, %c0_i32_1 : i32, i32, i32, i32
  }
  func.func @transform_1(%arg0: i32, %arg1: i32) -> (i32, i32, i32) {
    %c0_i32 = arith.constant 0 : i32
    %c0_i32_0 = arith.constant 0 : i32
    %c0_i32_1 = arith.constant 0 : i32
    return %c0_i32, %arg1, %c0_i32_0 : i32, i32, i32
  }
  func.func @transform_2(%arg0: i32, %arg1: i32) -> (i32, i32) {
    %c0_i32 = arith.constant 0 : i32
    %c0_i32_0 = arith.constant 0 : i32
    return %arg1, %c0_i32 : i32, i32
  }
  func.func @transform_3(%arg0: i32, %arg1: i32) -> (i32, i32, i32) {
    %c0_i32 = arith.constant 0 : i32
    %c0_i32_0 = arith.constant 0 : i32
    return %arg0, %arg1, %c0_i32 : i32, i32, i32
  }
}

</mosaic_0001>

<bundles_post_ra>
// kernel: conv_layer_forward.1
= control target key start
LH: loop header
LB: loop body
LE: loop exit
PB: predicated region body
PF: predicated region fallthrough
CT: control target
= control target key end

     0   :  { %s3069_s12 = smov 0   ;;  %s3071_s13 = smov 0   ;;  %s4201_s0 = inlined_call_operand.vmem [shape: bf16[2,18,18,4], index: 0, kind: input, shape index: {}]   ;;  %s4202_s1 = inlined_call_operand.vmem [shape: bf16[3,8,12], index: 1, kind: input, shape index: {}]   ;;  %s4203_s2 = inlined_call_operand.vmem [shape: f32[8,2], index: 2, kind: input, shape index: {}]   ;;  %s4204_s3 = inlined_call_operand.vmem [shape: bf16[2,8,256], index: 3, kind: output, shape index: {}]  }
   0x1   :  { %s3073_s14 = smov 0  }
   0x2 LB: > { %s25_s15 = sadd.s32 1, %s3038_s13  ;;  %p2478_p0 = scmp.ge.s32.totalorder %s3042_s14, 1  ;;  %s3042_s14 = sphi %s3073_s14, %s13_s14   ;;  %s3038_s13 = sphi %s3071_s13, %s4224_s13   ;;  %s3034_s12 = sphi %s3069_s12, %s4223_s12  }
   0x3   : > { %p27_p1 = scmp.ge.s32.totalorder %s25_s15, 2  ;;  %p169_p2 = scmp.lt.s32.totalorder %s3042_s14, 3 }
   0x5   : > { %s4226_s15 = smov (%p27_p1, %s25_s15), 0  ;;  %p170_p3 = pnand %p2478_p0, %p169_p2 }
   0x7   : > { %173 = sbr.rel (%p170_p3) target bundleno = 1092 (0x444), region = 32 }
   0xc   : > { %p205_p4 = scmp.lt.s32.totalorder %s3034_s12, 1  ;;  %vm696_vm0 = vcmask 1046528   ;;  %vm423_vm1 = vsmask.f32 7424  ;;  %s3044_s20 = smov 8   ;;  %vm777_vm2 = vcmask 31744  }
   0xd   : > { %s3045_s21 = smov 4   ;;  %vm810_vm3 = vcmask 64512   ;;  %vm1458_vm4 = vcmask 97280   ;;  %s3048_s30 = smov 1  }
   0xe   : > { %s4228_s12 = smov (!%p205_p4, %s3034_s12), 1 }
   0xf   : > { %s2842_s16 = smul.u32 216, %s4228_s12  ;;  %s2762_s4 = sshll.u32 %s4228_s12, 3 }
  0x10   : > { %s226_s7 = scalar_lea.vmem %s4204_s3, %s2762_s4 }
  0x11   : > { %s3093_s19 = scalar_lea.vmem %s4201_s0, %s2842_s16 }
  0x12   : > { %v2545_v0 = vld [vmem:[%s3093_s19 + $0x64] sm:$0xf]  ;;  %v2585_v1 = vld [vmem:[%s3093_s19 + $0x60] sm:$0xe]  ;;  %v2543_v6 = vld [vmem:[%s3093_s19 + $0x58] sm:$0xf] }
  0x13   : > { %v2874_v2 = vld [vmem:[%s3093_s19 + $0x68] ss:$0 sps:$4 sm:$0x11]   ;;  %v2633_v3 = vcombine.low %v2585_v1, %v2545_v0  ;;  %v2544_v4 = vld [vmem:[%s3093_s19 + $0x60] sm:$0xf] }
  0x14   : > { %v3099_v5 = vcombine.low %v2544_v4, %v2545_v0  ;;  %v2584_v7 = vld [vmem:[%s3093_s19 + $0x54] sm:$0xe]  ;;  %v1334_v9 = vrot.slane %v2874_v2, 1  ;;  %v2877_v10 = vld [vmem:[%s3093_s19 + $0x5c] ss:$0 sps:$4 sm:$0x11]  }
  0x15   : > { %v1333_v8 = vrot.slane %v2633_v3, 1  ;;  %v2632_v11 = vcombine.low %v2584_v7, %v2543_v6  ;;  %v1132_v12 = vshll.u32 %v2874_v2, 16  ;;  %v2542_v13 = vld [vmem:[%s3093_s19 + $0x54] sm:$0xf]  ;;  %v2560_v14 = vld [vmem:[%s3093_s19 + $0xc0] sm:$0xf] }
  0x16   : > { %v2561_v15 = vld [vmem:[%s3093_s19 + $0xc4] sm:$0xf]  ;;  %v1331_v18 = vrot.slane %v2877_v10, 1  ;;  %v3108_v19 = vcombine.low %v2542_v13, %v2543_v6  ;;  %v2593_v20 = vld [vmem:[%s3093_s19 + $0xc0] sm:$0xe]  ;;  %v1125_v24 = vshrl.u32 %v3099_v5, 16 }
  0x17   : > { %v1335_v16 = vsel %vm696_vm0, %v1333_v8, %v1334_v9  ;;  %v1330_v17 = vrot.slane %v2632_v11, 1  ;;  %v3112_v21 = vcombine.low %v2560_v14, %v2561_v15  ;;  %v2881_v22 = vld [vmem:[%s3093_s19 + $0xc8] ss:$0 sps:$4 sm:$0x11]   ;;  %v2641_v23 = vcombine.low %v2593_v20, %v2561_v15  ;;  %v2558_v28 = vld [vmem:[%s3093_s19 + $0xb4] sm:$0xf] }
  0x18   : > { %1374 = vrot.lane.b32.xlu1 %v1335_v16, %s3044_s20  ;;  %v1127_v25 = vshll.u32 %v3099_v5, 16  ;;  %v1134_v27 = vrot.slane %v1132_v12, 1  ;;  %v2559_v29 = vld [vmem:[%s3093_s19 + $0xb8] sm:$0xf]  ;;  %v1113_v30 = vshrl.u32 %v3108_v19, 16  ;;  %v1358_v32 = vrot.slane %v2881_v22, 1 }
  0x19   : > { %v1332_v26 = vsel %vm696_vm0, %v1330_v17, %v1331_v18  ;;  %v1357_v31 = vrot.slane %v2641_v23, 1  ;;  %v3122_v34 = vcombine.low %v2558_v28, %v2559_v29  ;;  %v2592_v35 = vld [vmem:[%s3093_s19 + $0xb4] sm:$0xe]  ;;  %v2884_v36 = vld [vmem:[%s3093_s19 + $0xbc] ss:$0 sps:$4 sm:$0x11]  }
  0x1a   : > { %1372 = vrot.lane.b32.xlu0 %v1332_v26, %s3044_s20  ;;  %v1129_v33 = vrot.slane %v1127_v25, 1  ;;  %v1221_v37 = vshrl.u32 %v3112_v21, 16  ;;  %v2640_v40 = vcombine.low %v2592_v35, %v2559_v29  ;;  %v1223_v41 = vshll.u32 %v3112_v21, 16  ;;  %v2556_v42 = vld [vmem:[%s3093_s19 + $0xa8] sm:$0xf] }
  0x1b   : > { %v1359_v38 = vsel %vm696_vm0, %v1357_v31, %v1358_v32  ;;  %v2557_v43 = vld [vmem:[%s3093_s19 + $0xac] sm:$0xf]  ;;  %v1355_v44 = vrot.slane %v2884_v36, 1  ;;  %v1228_v45 = vshll.u32 %v2881_v22, 16  ;;  %v1209_v46 = vshrl.u32 %v3122_v34, 16 }
  0x1c   : > { %v1130_v39 = vor.u32 %v1129_v33, %v1125_v24  ;;  %1390 = vrot.lane.b32.xlu1 %v1359_v38, %s3044_s20  ;;  %v1211_v47 = vshll.u32 %v3122_v34, 16  ;;  %v1354_v49 = vrot.slane %v2640_v40, 1  ;;  %v1225_v50 = vrot.slane %v1223_v41, 1  ;;  %v2887_v52 = vld [vmem:[%s3093_s19 + $0xb0] ss:$0 sps:$4 sm:$0x11]  }
  0x1d   : > { %v1216_v51 = vshll.u32 %v2884_v36, 16  ;;  %v1230_v53 = vrot.slane %v1228_v45, 1  ;;  %v1115_v55 = vshll.u32 %v3108_v19, 16  ;;  %v1120_v56 = vshll.u32 %v2877_v10, 16  ;;  %v2540_v57 = vld [vmem:[%s3093_s19 + $0x48] sm:$0xf] }
  0x1e   : > { %v1135_v48 = vsel %vm423_vm1, %v1130_v39, %v1134_v27  ;;  %v1213_v54 = vrot.slane %v1211_v47, 1  ;;  %v1356_v58 = vsel %vm696_vm0, %v1354_v49, %v1355_v44  ;;  %v1226_v59 = vor.u32 %v1225_v50, %v1221_v37  ;;  %v2541_v62 = vld [vmem:[%s3093_s19 + $0x4c] sm:$0xf]  ;;  %v2889_v3 = vld [vmem:[%s3093_s19 + $0x50] ss:$0 sps:$4 sm:$0x11]  }
  0x1f   : > { %1246 = vrot.lane.b32.xlu0 %v1135_v48, %s3045_s21  ;;  %v1218_v60 = vrot.slane %v1216_v51, 1  ;;  %v3140_v61 = vcombine.low %v2556_v42, %v2557_v43  ;;  %v1117_v0 = vrot.slane %v1115_v55, 1  ;;  %v1122_v1 = vrot.slane %v1120_v56, 1  ;;  %v2591_v9 = vld [vmem:[%s3093_s19 + $0xa8] sm:$0xe] }
  0x20   : > { %1388 = vrot.lane.b32.xlu1 %v1356_v58, %s3044_s20  ;;  %v1214_v63 = vor.u32 %v1213_v54, %v1209_v46  ;;  %v1204_v2 = vshll.u32 %v2887_v52, 16  ;;  %v1231_v4 = vsel %vm423_vm1, %v1226_v59, %v1230_v53  ;;  %v3148_v8 = vcombine.low %v2540_v57, %v2541_v62  ;;  %v2583_v10 = vld [vmem:[%s3093_s19 + $0x48] sm:$0xe]  ;;  %v2554_v15 = vld [vmem:[%s3093_s19 + $0x9c] sm:$0xf] }
  0x21   : > { %v1197_v6 = vshrl.u32 %v3140_v61, 16  ;;  %v1199_v7 = vshll.u32 %v3140_v61, 16  ;;  %v1118_v12 = vor.u32 %v1117_v0, %v1113_v30  ;;  %v1108_v14 = vshll.u32 %v2889_v3, 16  ;;  %v2555_v16 = vld [vmem:[%s3093_s19 + $0xa0] sm:$0xf] }
  0x22   : > { %v1219_v11 = vsel %vm423_vm1, %v1214_v63, %v1218_v60  ;;  %v1206_v13 = vrot.slane %v1204_v2, 1  ;;  %v1101_v18 = vshrl.u32 %v3148_v8, 16  ;;  %v1103_v20 = vshll.u32 %v3148_v8, 16  ;;  %v3161_v27 = vld [vmem:[%s3093_s19 + $0xa4] ss:$0 sps:$4 sm:$0x11]  }
  0x23   : > { %1262 = vrot.lane.b32.xlu0 %v1231_v4, %s3045_s21  ;;  %v1201_v17 = vrot.slane %v1199_v7, 1  ;;  %v2639_v22 = vcombine.low %v2591_v9, %v2557_v43  ;;  %v1123_v23 = vsel %vm423_vm1, %v1118_v12, %v1122_v1  ;;  %v1110_v24 = vrot.slane %v1108_v14, 1  ;;  %v2538_v32 = vld [vmem:[%s3093_s19 + $0x3c] sm:$0xf]  ;;  %v2539_v37 = vld [vmem:[%s3093_s19 + $0x40] sm:$0xf] }
  0x24   : > { %1260 = vrot.lane.b32.xlu1 %v1219_v11, %s3045_s21  ;;  %v1352_v25 = vrot.slane %v2887_v52, 1  ;;  %v2631_v26 = vcombine.low %v2583_v10, %v2541_v62  ;;  %v1105_v29 = vrot.slane %v1103_v20, 1  ;;  %v1328_v31 = vrot.slane %v2889_v3, 1  ;;  %v2895_v41 = vld [vmem:[%s3093_s19 + $0x44] ss:$0 sps:$4 sm:$0x11]  }
  0x25   : > { %v1202_v28 = vor.u32 %v1201_v17, %v1197_v6  ;;  %v1351_v30 = vrot.slane %v2639_v22, 1  ;;  %v3165_v35 = vcombine.low %v2554_v15, %v2555_v16  ;;  %v1192_v36 = vshll.u32 %v3161_v27, 16  ;;  %v2590_v42 = vld [vmem:[%s3093_s19 + $0x9c] sm:$0xe]  ;;  %v2552_v51 = vld [vmem:[%s3093_s19 + $0x90] sm:$0xf] }
  0x26   : > { %v1327_v33 = vrot.slane %v2631_v26, 1  ;;  %v1106_v39 = vor.u32 %v1105_v29, %v1101_v18  ;;  %v3170_v40 = vcombine.low %v2538_v32, %v2539_v37  ;;  %v2582_v46 = vld [vmem:[%s3093_s19 + $0x3c] sm:$0xe]  ;;  %v1096_v50 = vshll.u32 %v2895_v41, 16  ;;  %v2553_v56 = vld [vmem:[%s3093_s19 + $0x94] sm:$0xf] }
  0x27   : > { %1244 = vrot.lane.b32.xlu0 %v1123_v23, %s3045_s21  ;;  %v1207_v38 = vsel %vm423_vm1, %v1202_v28, %v1206_v13  ;;  %v1353_v43 = vsel %vm696_vm0, %v1351_v30, %v1352_v25  ;;  %v1185_v44 = vshrl.u32 %v3165_v35, 16  ;;  %v1187_v45 = vshll.u32 %v3165_v35, 16  ;;  %v3189_v62 = vld [vmem:[%s3093_s19 + $0x98] ss:$0 sps:$4 sm:$0x11]  }
  0x28   : > { %1258 = vrot.lane.b32.xlu1 %v1207_v38, %s3045_s21  ;;  %v1111_v47 = vsel %vm423_vm1, %v1106_v39, %v1110_v24  ;;  %v1089_v48 = vshrl.u32 %v3170_v40, 16  ;;  %v1091_v49 = vshll.u32 %v3170_v40, 16  ;;  %v1329_v52 = vsel %vm696_vm0, %v1327_v33, %v1328_v31  ;;  %v2536_v2 = vld [vmem:[%s3093_s19 + $0x30] sm:$0xf]  ;;  %v2537_v3 = vld [vmem:[%s3093_s19 + $0x34] sm:$0xf] }
  0x29   : > { %v1189_v53 = vrot.slane %v1187_v45, 1  ;;  %v1194_v54 = vrot.slane %v1192_v36, 1  ;;  %v2638_v55 = vcombine.low %v2590_v42, %v2555_v16  ;;  %v1098_v58 = vrot.slane %v1096_v50, 1  ;;  %v3203_v13 = vld [vmem:[%s3093_s19 + $0x38] ss:$0 sps:$4 sm:$0x11]  }
  0x2a   : > { %v1093_v57 = vrot.slane %v1091_v49, 1  ;;  %v2630_v59 = vcombine.low %v2582_v46, %v2539_v37  ;;  %v3186_v60 = vcombine.low %v2552_v51, %v2553_v56  ;;  %v1349_v1 = vrot.slane %v3161_v27, 1  ;;  %v2589_v14 = vld [vmem:[%s3093_s19 + $0x90] sm:$0xe]  ;;  %v2550_v22 = vld [vmem:[%s3093_s19 + $0x84] sm:$0xf] }
  0x2b   : > { %1242 = vrot.lane.b32.xlu0 %v1111_v47, %s3045_s21  ;;  %v1190_v63 = vor.u32 %v1189_v53, %v1185_v44  ;;  %v1348_v0 = vrot.slane %v2638_v55, 1  ;;  %v1180_v9 = vshll.u32 %v3189_v62, 16  ;;  %v1325_v11 = vrot.slane %v2895_v41, 1  ;;  %v2581_v20 = vld [vmem:[%s3093_s19 + $0x30] sm:$0xe] }
  0x2c   : > { %1386 = vrot.lane.b32.xlu1 %v1353_v43, %s3044_s20  ;;  %v1094_v4 = vor.u32 %v1093_v57, %v1089_v48  ;;  %v1173_v6 = vshrl.u32 %v3186_v60, 16  ;;  %v1175_v7 = vshll.u32 %v3186_v60, 16  ;;  %v3200_v12 = vcombine.low %v2536_v2, %v2537_v3  ;;  %v2551_v27 = vld [vmem:[%s3093_s19 + $0x88] sm:$0xf]  ;;  %v2534_v37 = vld [vmem:[%s3093_s19 + $0x24] sm:$0xf] }
  0x2d   : > { %v1195_v10 = vsel %vm423_vm1, %v1190_v63, %v1194_v54  ;;  %v1324_v16 = vrot.slane %v2630_v59, 1  ;;  %v2637_v18 = vcombine.low %v2589_v14, %v2553_v56  ;;  %v1182_v23 = vrot.slane %v1180_v9, 1  ;;  %v3220_v36 = vld [vmem:[%s3093_s19 + $0x8c] ss:$0 sps:$4 sm:$0x11]  }
  0x2e   : > { %v1099_v15 = vsel %vm423_vm1, %v1094_v4, %v1098_v58  ;;  %v1177_v17 = vrot.slane %v1175_v7, 1  ;;  %v1077_v24 = vshrl.u32 %v3200_v12, 16  ;;  %v1079_v25 = vshll.u32 %v3200_v12, 16  ;;  %v2535_v42 = vld [vmem:[%s3093_s19 + $0x28] sm:$0xf] }
  0x2f   : > { %1370 = vrot.lane.b32.xlu0 %v1329_v52, %s3044_s20  ;;  %v1084_v26 = vshll.u32 %v3203_v13, 16  ;;  %v1350_v28 = vsel %vm696_vm0, %v1348_v0, %v1349_v1  ;;  %v1346_v30 = vrot.slane %v3189_v62, 1  ;;  %v2629_v31 = vcombine.low %v2581_v20, %v2537_v3  ;;  %v3230_v47 = vld [vmem:[%s3093_s19 + $0x2c] ss:$0 sps:$4 sm:$0x11]  }
  0x30   : > { %1256 = vrot.lane.b32.xlu1 %v1195_v10, %s3045_s21  ;;  %v1178_v29 = vor.u32 %v1177_v17, %v1173_v6  ;;  %v1081_v32 = vrot.slane %v1079_v25, 1  ;;  %v3217_v33 = vcombine.low %v2550_v22, %v2551_v27  ;;  %v1326_v38 = vsel %vm696_vm0, %v1324_v16, %v1325_v11  ;;  %v2588_v52 = vld [vmem:[%s3093_s19 + $0x84] sm:$0xe]  ;;  %v2548_v56 = vld [vmem:[%s3093_s19 + $0x78] sm:$0xf] }
  0x31   : > { %v1086_v39 = vrot.slane %v1084_v26, 1  ;;  %v1345_v41 = vrot.slane %v2637_v18, 1  ;;  %v1322_v45 = vrot.slane %v3203_v13, 1  ;;  %v1321_v48 = vrot.slane %v2629_v31, 1  ;;  %v2580_v55 = vld [vmem:[%s3093_s19 + $0x24] sm:$0xe] }
  0x32   : > { %v1183_v43 = vsel %vm423_vm1, %v1178_v29, %v1182_v23  ;;  %v1082_v44 = vor.u32 %v1081_v32, %v1077_v24  ;;  %v1163_v46 = vshll.u32 %v3217_v33, 16  ;;  %v1161_v49 = vshrl.u32 %v3217_v33, 16  ;;  %v2549_v62 = vld [vmem:[%s3093_s19 + $0x7c] sm:$0xf]  ;;  %v2532_v7 = vld [vmem:[%s3093_s19 + $0x18] sm:$0xf] }
  0x33   : > { %1240 = vrot.lane.b32.xlu0 %v1099_v15, %s3045_s21  ;;  %v1168_v50 = vshll.u32 %v3220_v36, 16  ;;  %v3234_v51 = vcombine.low %v2534_v37, %v2535_v42  ;;  %v1072_v54 = vshll.u32 %v3230_v47, 16  ;;  %v2636_v63 = vcombine.low %v2588_v52, %v2551_v27  ;;  %v3249_v1 = vld [vmem:[%s3093_s19 + $0x80] ss:$0 sps:$4 sm:$0x11]  }
  0x34   : > { %1384 = vrot.lane.b32.xlu1 %v1350_v28, %s3044_s20  ;;  %v1165_v53 = vrot.slane %v1163_v46, 1  ;;  %v1087_v57 = vsel %vm423_vm1, %v1082_v44, %v1086_v39  ;;  %v3246_v0 = vcombine.low %v2548_v56, %v2549_v62  ;;  %v1347_v2 = vsel %vm696_vm0, %v1345_v41, %v1346_v30  ;;  %v2533_v13 = vld [vmem:[%s3093_s19 + $0x1c] sm:$0xf]  ;;  %v3261_v18 = vld [vmem:[%s3093_s19 + $0x20] ss:$0 sps:$4 sm:$0x11]  }
  0x35   : > { %v1065_v58 = vshrl.u32 %v3234_v51, 16  ;;  %v1067_v59 = vshll.u32 %v3234_v51, 16  ;;  %v1170_v4 = vrot.slane %v1168_v50, 1  ;;  %v1343_v9 = vrot.slane %v3220_v36, 1  ;;  %v2587_v28 = vld [vmem:[%s3093_s19 + $0x78] sm:$0xe] }
  0x36   : > { %v1166_v3 = vor.u32 %v1165_v53, %v1161_v49  ;;  %v2628_v10 = vcombine.low %v2580_v55, %v2535_v42  ;;  %v1151_v11 = vshll.u32 %v3246_v0, 16  ;;  %v1323_v14 = vsel %vm696_vm0, %v1321_v48, %v1322_v45  ;;  %v2579_v29 = vld [vmem:[%s3093_s19 + $0x18] sm:$0xe]  ;;  %v2546_v32 = vld [vmem:[%s3093_s19 + $0x6c] sm:$0xf] }
  0x37   : > { %1368 = vrot.lane.b32.xlu0 %v1326_v38, %s3044_s20  ;;  %v1069_v6 = vrot.slane %v1067_v59, 1  ;;  %v1074_v16 = vrot.slane %v1072_v54, 1  ;;  %v3258_v17 = vcombine.low %v2532_v7, %v2533_v13  ;;  %v1342_v20 = vrot.slane %v2636_v63, 1  ;;  %v2547_v36 = vld [vmem:[%s3093_s19 + $0x70] sm:$0xf] }
  0x38   : > { %1254 = vrot.lane.b32.xlu1 %v1183_v43, %s3045_s21  ;;  %v1319_v22 = vrot.slane %v3230_v47, 1  ;;  %v1149_v23 = vshrl.u32 %v3246_v0, 16  ;;  %v1156_v24 = vshll.u32 %v3249_v1, 16  ;;  %v1171_v25 = vsel %vm423_vm1, %v1166_v3, %v1170_v4  ;;  %v2530_v42 = vld [vmem:[%s3093_s19 + $0xc] sm:$0xf] }
  0x39   : > { %v1070_v15 = vor.u32 %v1069_v6, %v1065_v58  ;;  %v1153_v26 = vrot.slane %v1151_v11, 1  ;;  %v1055_v27 = vshll.u32 %v3258_v17, 16  ;;  %v1318_v30 = vrot.slane %v2628_v10, 1  ;;  %v3282_v45 = vld [vmem:[%s3093_s19 + $0x74] ss:$0 sps:$4 sm:$0x11]  }
  0x3a   : > { %v1053_v31 = vshrl.u32 %v3258_v17, 16  ;;  %v1060_v39 = vshll.u32 %v3261_v18, 16  ;;  %v3277_v41 = vcombine.low %v2546_v32, %v2547_v36  ;;  %v2635_v43 = vcombine.low %v2587_v28, %v2549_v62  ;;  %v2531_v50 = vld [vmem:[%s3093_s19 + $0x10] sm:$0xf]  ;;  %v261_v59 = vld [vmem:[%s3093_s19 + $0xb4] sm:$0xf] }
  0x3b   : > { %1238 = vrot.lane.b32.xlu0 %v1087_v57, %s3045_s21  ;;  %v1075_v37 = vsel %vm423_vm1, %v1070_v15, %v1074_v16  ;;  %v1057_v38 = vrot.slane %v1055_v27, 1  ;;  %v2627_v44 = vcombine.low %v2579_v29, %v2533_v13  ;;  %v1344_v46 = vsel %vm696_vm0, %v1342_v20, %v1343_v9  ;;  %v3292_v54 = vld [vmem:[%s3093_s19 + $0x14] ss:$0 sps:$4 sm:$0x11]   ;;  %v3301_v4 = vld [vmem:[%s3093_s19 + $0xb8] sm:$0xf] }
  0x3c   : > { %1382 = vrot.lane.b32.xlu1 %v1347_v2, %s3044_s20  ;;  %v1154_v47 = vor.u32 %v1153_v26, %v1149_v23  ;;  %v1158_v48 = vrot.slane %v1156_v24, 1  ;;  %v1139_v49 = vshll.u32 %v3277_v41, 16  ;;  %v1320_v52 = vsel %vm696_vm0, %v1318_v30, %v1319_v22  ;;  %v2586_v9 = vld [vmem:[%s3093_s19 + $0x6c] sm:$0xe]  ;;  %v245_v15 = vld [vmem:[%s3093_s19 + $0x54] sm:$0xf] }
  0x3d   : > { %v3289_v53 = vcombine.low %v2530_v42, %v2531_v50  ;;  %v1058_v55 = vor.u32 %v1057_v38, %v1053_v31  ;;  %v1062_v56 = vrot.slane %v1060_v39, 1  ;;  %v1340_v57 = vrot.slane %v3249_v1, 1  ;;  %v3316_v20 = vld [vmem:[%s3093_s19 + $0x58] sm:$0xf]  ;;  %v3335_v39 = vld [vmem:[%s3093_s19 + $0xd0] sm:$0xf] }
  0x3e   : > { %v1316_v58 = vrot.slane %v3261_v18, 1  ;;  %v1339_v62 = vrot.slane %v2635_v43, 1  ;;  %v1315_v63 = vrot.slane %v2627_v44, 1  ;;  %v1137_v2 = vshrl.u32 %v3277_v41, 16  ;;  %v2578_v18 = vld [vmem:[%s3093_s19 + $0xc] sm:$0xe] }
  0x3f   : > { %1366 = vrot.lane.b32.xlu0 %v1323_v14, %s3044_s20  ;;  %v1043_v3 = vshll.u32 %v3289_v53, 16  ;;  %v1159_v6 = vsel %vm423_vm1, %v1154_v47, %v1158_v48  ;;  %v1141_v7 = vrot.slane %v1139_v49, 1  ;;  %v1144_v1 = vshll.u32 %v3282_v45, 16  ;;  %v3321_v26 = vld [vmem:[%s3093_s19 + $0xbc] ss:$0 sps:$4 sm:$0x11]  }
  0x40   : > { %1252 = vrot.lane.b32.xlu1 %v1171_v25, %s3045_s21  ;;  %v1041_v10 = vshrl.u32 %v3289_v53, 16  ;;  %v1048_v13 = vshll.u32 %v3292_v54, 16  ;;  %v3310_v14 = vcombine.low %v261_v59, %v3301_v4  ;;  %v1063_v16 = vsel %vm423_vm1, %v1058_v55, %v1062_v56  ;;  %v3329_v32 = vld [vmem:[%s3093_s19 + $0x5c] ss:$0 sps:$4 sm:$0x11]  }
  0x41   : > { %v1045_v11 = vrot.slane %v1043_v3, 1  ;;  %v1341_v22 = vsel %vm696_vm0, %v1339_v62, %v1340_v57  ;;  %v2634_v23 = vcombine.low %v2586_v9, %v2547_v36  ;;  %v1142_v24 = vor.u32 %v1141_v7, %v1137_v2  ;;  %v286_v57 = vld [vmem:[%s3093_s19 + $0x54] sm:$0xe] }
  0x42   : > { %v1146_v25 = vrot.slane %v1144_v1, 1  ;;  %v607_v27 = vshll.u32 %v3310_v14, 16  ;;  %v3325_v28 = vcombine.low %v245_v15, %v3316_v20  ;;  %v1050_v30 = vrot.slane %v1048_v13, 1  ;;  %v3374_v15 = vld [vmem:[%s3093_s19 + $0xac] sm:$0xf] }
  0x43   : > { %1236 = vrot.lane.b32.xlu0 %v1075_v37, %s3045_s21  ;;  %v1046_v29 = vor.u32 %v1045_v11, %v1041_v10  ;;  %v2626_v31 = vcombine.low %v2578_v18, %v2531_v50  ;;  %v2675_v37 = vld [vmem:[%s3093_s19 + $0xcc] sm:$0xf]  ;;  %v1317_v36 = vsel %vm696_vm0, %v1315_v63, %v1316_v58  ;;  %v1336_v42 = vrot.slane %v2634_v23, 1  ;;  %v294_v50 = vld [vmem:[%s3093_s19 + $0xb4] sm:$0xe] }
  0x44   : > { %1380 = vrot.lane.b32.xlu1 %v1344_v46, %s3044_s20  ;;  %v511_v38 = vshll.u32 %v3325_v28, 16  ;;  %v1337_v43 = vrot.slane %v3282_v45, 1  ;;  %v605_v44 = vshrl.u32 %v3310_v14, 16  ;;  %v3341_v46 = vcombine.low %v2675_v37, %v3335_v39  ;;  %v3352_v58 = vld [vmem:[%s3093_s19 + $0x70] sm:$0xf] }
  0x45   : > { %v1147_v47 = vsel %vm423_vm1, %v1142_v24, %v1146_v25  ;;  %v609_v48 = vrot.slane %v607_v27, 1  ;;  %v612_v49 = vshll.u32 %v3321_v26, 16  ;;  %v1051_v55 = vsel %vm423_vm1, %v1046_v29, %v1050_v30  ;;  %v3367_v10 = vld [vmem:[%s3093_s19 + $0x74] ss:$0 sps:$4 sm:$0x11]  }
  0x46   : > { %v1312_v56 = vrot.slane %v2626_v31, 1  ;;  %v1313_v45 = vrot.slane %v3292_v54, 1  ;;  %v509_v59 = vshrl.u32 %v3325_v28, 16  ;;  %v513_v62 = vrot.slane %v511_v38, 1  ;;  %v243_v24 = vld [vmem:[%s3093_s19 + $0x48] sm:$0xf] }
  0x47   : > { %1364 = vrot.lane.b32.xlu0 %v1320_v52, %s3044_s20  ;;  %v2659_v52 = vld [vmem:[%s3093_s19 + $0x6c] sm:$0xf]  ;;  %v516_v63 = vshll.u32 %v3329_v32, 16  ;;  %v2529_v3 = vcombine.low %v294_v50, %v3301_v4  ;;  %v1990_v54 = vshll.u32 %v3341_v46, 16  ;;  %v1338_v7 = vsel %vm696_vm0, %v1336_v42, %v1337_v43  ;;  %v259_v4 = vld [vmem:[%s3093_s19 + $0xa8] sm:$0xf] }
  0x48   : > { %1250 = vrot.lane.b32.xlu1 %v1159_v6, %s3045_s21  ;;  %v3357_v2 = vcombine.low %v2659_v52, %v3352_v58  ;;  %v3362_v6 = vld [vmem:[%s3093_s19 + $0xd4] ss:$0 sps:$4 sm:$0x11]   ;;  %v610_v1 = vor.u32 %v609_v48, %v605_v44  ;;  %v614_v9 = vrot.slane %v612_v49, 1  ;;  %v743_v11 = vrot.slane %v3321_v26, 1 }
  0x49   : > { %v2521_v13 = vcombine.low %v286_v57, %v3316_v20  ;;  %v514_v18 = vor.u32 %v513_v62, %v509_v59  ;;  %v742_v25 = vrot.slane %v2529_v3, 1  ;;  %v1988_v27 = vshrl.u32 %v3341_v46, 16  ;;  %v2708_v30 = vld [vmem:[%s3093_s19 + $0xcc] sm:$0xe]  ;;  %v2673_v62 = vld [vmem:[%s3093_s19 + $0xc0] sm:$0xf] }
  0x4a   : > { %v1894_v23 = vshll.u32 %v3357_v2, 16  ;;  %v1992_v29 = vrot.slane %v1990_v54, 1  ;;  %v1995_v26 = vshll.u32 %v3362_v6, 16  ;;  %v615_v20 = vsel %vm423_vm1, %v610_v1, %v614_v9  ;;  %v3388_v37 = vld [vmem:[%s3093_s19 + $0x4c] sm:$0xf] }
  0x4b   : > { %1234 = vrot.lane.b32.xlu0 %v1063_v16, %s3045_s21  ;;  %v1314_v16 = vsel %vm696_vm0, %v1312_v56, %v1313_v45  ;;  %v3385_v31 = vcombine.low %v259_v4, %v3374_v15  ;;  %v719_v38 = vrot.slane %v3329_v32, 1  ;;  %v3393_v42 = vcombine.low %v243_v24, %v3388_v37  ;;  %v3402_v32 = vld [vmem:[%s3093_s19 + $0xb0] ss:$0 sps:$4 sm:$0x11]   ;;  %v3422_v4 = vld [vmem:[%s3093_s19 + $0x64] sm:$0xf] }
  0x4c   : > { %1378 = vrot.lane.b32.xlu1 %v1341_v22, %s3044_s20  ;;  %v518_v22 = vrot.slane %v516_v63, 1  ;;  %v1892_v44 = vshrl.u32 %v3357_v2, 16  ;;  %v1899_v48 = vshll.u32 %v3367_v10, 16  ;;  %v1993_v49 = vor.u32 %v1992_v29, %v1988_v27  ;;  %v3407_v57 = vld [vmem:[%s3093_s19 + $0x50] ss:$0 sps:$4 sm:$0x11]  }
  0x4d   : > { %v1997_v50 = vrot.slane %v1995_v26, 1  ;;  %v2756_v52 = vcombine.low %v2708_v30, %v3335_v39  ;;  %v744_v56 = vsel %vm696_vm0, %v742_v25, %v743_v11  ;;  %v595_v45 = vshll.u32 %v3385_v31, 16  ;;  %v3413_v63 = vld [vmem:[%s3093_s19 + $0xc4] sm:$0xf]  ;;  %v293_v25 = vld [vmem:[%s3093_s19 + $0xa8] sm:$0xe] }
  0x4e   : > { %v519_v43 = vsel %vm423_vm1, %v514_v18, %v518_v22  ;;  %v499_v59 = vshll.u32 %v3393_v42, 16  ;;  %v1901_v54 = vrot.slane %v1899_v48, 1  ;;  %v2125_v11 = vrot.slane %v3362_v6, 1 }
  0x4f   : > { %1362 = vrot.lane.b32.xlu0 %v1317_v36, %s3044_s20  ;;  %v718_v36 = vrot.slane %v2521_v13, 1  ;;  %v1998_v1 = vsel %vm423_vm1, %v1993_v49, %v1997_v50  ;;  %v2124_v9 = vrot.slane %v2756_v52, 1  ;;  %v2657_v13 = vld [vmem:[%s3093_s19 + $0x60] sm:$0xf]  ;;  %v597_v18 = vrot.slane %v595_v45, 1 }
  0x50   : > { %1248 = vrot.lane.b32.xlu1 %v1147_v47, %s3045_s21  ;;  %v1896_v47 = vrot.slane %v1894_v23, 1  ;;  %v600_v22 = vshll.u32 %v3402_v32, 16  ;;  %v3427_v23 = vcombine.low %v2673_v62, %v3413_v63  ;;  %v501_v24 = vrot.slane %v499_v59, 1  ;;  %v3448_v49 = vld [vmem:[%s3093_s19 + $0xa0] sm:$0xf] }
  0x51   : > { %v720_v39 = vsel %vm696_vm0, %v718_v36, %v719_v38  ;;  %v504_v6 = vshll.u32 %v3407_v57, 16  ;;  %v2101_v26 = vrot.slane %v3367_v10, 1  ;;  %v3437_v30 = vcombine.low %v2657_v13, %v3422_v4  ;;  %v3442_v38 = vld [vmem:[%s3093_s19 + $0xc8] ss:$0 sps:$4 sm:$0x11]  }
  0x52   : > { %v1897_v3 = vor.u32 %v1896_v47, %v1892_v44  ;;  %v2126_v36 = vsel %vm696_vm0, %v2124_v9, %v2125_v11  ;;  %v602_v44 = vrot.slane %v600_v22, 1  ;;  %v2528_v47 = vcombine.low %v293_v25, %v3374_v15  ;;  %v257_v10 = vld [vmem:[%s3093_s19 + $0x9c] sm:$0xf]  ;;  %v3454_v45 = vld [vmem:[%s3093_s19 + $0x68] ss:$0 sps:$4 sm:$0x11]  }
  0x53   : > { %1232 = vrot.lane.b32.xlu0 %v1051_v55, %s3045_s21  ;;  %v2700_v55 = vld [vmem:[%s3093_s19 + $0x6c] sm:$0xe]  ;;  %v1978_v48 = vshll.u32 %v3427_v23, 16  ;;  %v506_v52 = vrot.slane %v504_v6, 1  ;;  %v1882_v59 = vshll.u32 %v3437_v30, 16  ;;  %v740_v15 = vrot.slane %v3402_v32, 1 }
  0x54   : > { %1376 = vrot.lane.b32.xlu1 %v1338_v7, %s3044_s20  ;;  %v2748_v7 = vcombine.low %v2700_v55, %v3352_v58  ;;  %v497_v58 = vshrl.u32 %v3393_v42, 16  ;;  %v1902_v27 = vsel %vm423_vm1, %v1897_v3, %v1901_v54  ;;  %v1983_v62 = vshll.u32 %v3442_v38, 16  ;;  %v241_v3 = vld [vmem:[%s3093_s19 + $0x3c] sm:$0xf]  ;;  %v3465_v54 = vld [vmem:[%s3093_s19 + $0x40] sm:$0xf] }
  0x55   : > { %v1980_v9 = vrot.slane %v1978_v48, 1  ;;  %v2707_v11 = vld [vmem:[%s3093_s19 + $0xc0] sm:$0xe]  ;;  %v1880_v22 = vshrl.u32 %v3437_v30, 16  ;;  %v3477_v6 = vcombine.low %v241_v3, %v3465_v54 }
  0x56   : > { %v2100_v29 = vrot.slane %v2748_v7, 1  ;;  %v502_v50 = vor.u32 %v501_v24, %v497_v58  ;;  %v739_v7 = vrot.slane %v2528_v47, 1  ;;  %v1884_v58 = vrot.slane %v1882_v59, 1  ;;  %v3493_v47 = vld [vmem:[%s3093_s19 + $0x44] ss:$0 sps:$4 sm:$0x11]  }
  0x57   : > { %1360 = vrot.lane.b32.xlu0 %v1314_v16, %s3044_s20  ;;  %v593_v16 = vshrl.u32 %v3385_v31, 16  ;;  %v1887_v24 = vshll.u32 %v3454_v45, 16  ;;  %v1985_v25 = vrot.slane %v1983_v62, 1  ;;  %v2122_v59 = vrot.slane %v3442_v38, 1  ;;  %v292_v38 = vld [vmem:[%s3093_s19 + $0x9c] sm:$0xe] }
  0x58   : > { %646 = vrot.lane.b32.xlu1 %v615_v20, %s3045_s21  ;;  %v285_v20 = vld [vmem:[%s3093_s19 + $0x48] sm:$0xe]  ;;  %v507_v32 = vsel %vm423_vm1, %v502_v50, %v506_v52  ;;  %v487_v50 = vshll.u32 %v3477_v6, 16  ;;  %v2655_v52 = vld [vmem:[%s3093_s19 + $0x54] sm:$0xf] }
  0x59   : > { %v2520_v55 = vcombine.low %v285_v20, %v3388_v37 }
  0x5b   : > { %630 = vrot.lane.b32.xlu0 %v519_v43, %s3045_s21  ;;  %v598_v43 = vor.u32 %v597_v18, %v593_v16  ;;  %v715_v13 = vrot.slane %v2520_v55, 1  ;;  %v716_v16 = vrot.slane %v3407_v57, 1  ;;  %v2699_v18 = vld [vmem:[%s3093_s19 + $0x60] sm:$0xe]  ;;  %v3499_v55 = vld [vmem:[%s3093_s19 + $0x58] sm:$0xf] }
  0x5c   : > { %775 = vrot.lane.b32.xlu1 %v744_v56, %s3044_s20  ;;  %v2102_v56 = vsel %vm696_vm0, %v2100_v29, %v2101_v26  ;;  %v3482_v29 = vld [vmem:[%s3093_s19 + $0xa4] ss:$0 sps:$4 sm:$0x11]   ;;  %v741_v26 = vsel %vm696_vm0, %v739_v7, %v740_v15 }
  0x5d   : > { %v603_v37 = vsel %vm423_vm1, %v598_v43, %v602_v44  ;;  %v3488_v43 = vld [vmem:[%s3093_s19 + $0xb8] sm:$0xf]  ;;  %v2747_v44 = vcombine.low %v2699_v18, %v3422_v4  ;;  %v717_v48 = vsel %vm696_vm0, %v715_v13, %v716_v16  ;;  %v485_v13 = vshrl.u32 %v3477_v6, 16  ;;  %v284_v18 = vld [vmem:[%s3093_s19 + $0x3c] sm:$0xe] }
  0x5e   : > { %v489_v16 = vrot.slane %v487_v50, 1  ;;  %v239_v50 = vld [vmem:[%s3093_s19 + $0x30] sm:$0xf] }
  0x5f   : > { %759 = vrot.lane.b32.xlu0 %v720_v39, %s3044_s20  ;;  %v3461_v39 = vcombine.low %v257_v10, %v3448_v49  ;;  %v1885_v10 = vor.u32 %v1884_v58, %v1880_v22  ;;  %v2097_v7 = vrot.slane %v2747_v44, 1  ;;  %v3521_v22 = vld [vmem:[%s3093_s19 + $0xbc] ss:$0 sps:$4 sm:$0x11]   ;;  %v255_v44 = vld [vmem:[%s3093_s19 + $0x90] sm:$0xf] }
  0x60   : > { %2029 = vrot.lane.b32.xlu1 %v1998_v1, %s3045_s21  ;;  %v1976_v1 = vshrl.u32 %v3427_v23, 16 }
  0x61   : > { %v583_v57 = vshll.u32 %v3461_v39, 16  ;;  %v581_v62 = vshrl.u32 %v3461_v39, 16 }
  0x62   : > { %v1981_v20 = vor.u32 %v1980_v9, %v1976_v1  ;;  %v2098_v1 = vrot.slane %v3454_v45, 1  ;;  %v492_v9 = vshll.u32 %v3493_v47, 16 }
  0x63   : > { %2013 = vrot.lane.b32.xlu0 %v1902_v27, %s3045_s21  ;;  %v2755_v27 = vcombine.low %v2707_v11, %v3413_v63  ;;  %v1889_v63 = vrot.slane %v1887_v24, 1  ;;  %v585_v3 = vrot.slane %v583_v57, 1  ;;  %v3514_v11 = vcombine.low %v2655_v52, %v3499_v55  ;;  %v3527_v57 = vld [vmem:[%s3093_s19 + $0x5c] ss:$0 sps:$4 sm:$0x11]  }
  0x64   : > { %2157 = vrot.lane.b32.xlu1 %v2126_v36, %s3044_s20  ;;  %v2671_v36 = vld [vmem:[%s3093_s19 + $0xb4] sm:$0xf]  ;;  %v1986_v15 = vsel %vm423_vm1, %v1981_v20, %v1985_v25  ;;  %v2519_v20 = vcombine.low %v284_v18, %v3465_v54 }
  0x65   : > { %v3504_v4 = vcombine.low %v2671_v36, %v3488_v43  ;;  %v586_v24 = vor.u32 %v585_v3, %v581_v62  ;;  %v1870_v36 = vshll.u32 %v3514_v11, 16  ;;  %v3539_v52 = vld [vmem:[%s3093_s19 + $0x34] sm:$0xf]  ;;  %v737_v62 = vrot.slane %v3482_v29, 1 }
  0x66   : > { %v2706_v3 = vld [vmem:[%s3093_s19 + $0xb4] sm:$0xe] }
  0x67   : > { %2141 = vrot.lane.b32.xlu0 %v2102_v56, %s3044_s20  ;;  %v2121_v56 = vrot.slane %v2755_v27, 1  ;;  %v1966_v45 = vshll.u32 %v3504_v4, 16  ;;  %v2527_v27 = vcombine.low %v292_v38, %v3448_v49  ;;  %v1964_v49 = vshrl.u32 %v3504_v4, 16 }
  0x68   : > { %644 = vrot.lane.b32.xlu1 %v603_v37, %s3045_s21  ;;  %v588_v37 = vshll.u32 %v3482_v29, 16  ;;  %v3554_v38 = vcombine.low %v239_v50, %v3539_v52  ;;  %v1868_v29 = vshrl.u32 %v3514_v11, 16  ;;  %v2653_v50 = vld [vmem:[%s3093_s19 + $0x48] sm:$0xf] }
  0x69   : > { %v2123_v58 = vsel %vm696_vm0, %v2121_v56, %v2122_v59  ;;  %v1968_v56 = vrot.slane %v1966_v45, 1  ;;  %v1971_v59 = vshll.u32 %v3521_v22, 16 }
  0x6a   : > { %v590_v25 = vrot.slane %v588_v37, 1  ;;  %4212 = vst [vmem:[#allocation4_spill] sm:$0xff] %v3554_v38 }
  0x6b   : > { %628 = vrot.lane.b32.xlu0 %v507_v32, %s3045_s21  ;;  %v1890_v32 = vsel %vm423_vm1, %v1885_v10, %v1889_v63  ;;  %v2099_v10 = vsel %vm696_vm0, %v2097_v7, %v2098_v1  ;;  %v490_v63 = vor.u32 %v489_v16, %v485_v13  ;;  %v712_v7 = vrot.slane %v2519_v20, 1  ;;  %v2698_v16 = vld [vmem:[%s3093_s19 + $0x54] sm:$0xe] }
  0x6c   : > { %773 = vrot.lane.b32.xlu1 %v741_v26, %s3044_s20  ;;  %v494_v26 = vrot.slane %v492_v9, 1  ;;  %v591_v54 = vsel %vm423_vm1, %v586_v24, %v590_v25  ;;  %v713_v1 = vrot.slane %v3493_v47, 1  ;;  %v1875_v9 = vshll.u32 %v3527_v57, 16 }
  0x6d   : > { %v1872_v13 = vrot.slane %v1870_v36, 1  ;;  %v1969_v18 = vor.u32 %v1968_v56, %v1964_v49  ;;  %v1973_v45 = vrot.slane %v1971_v59, 1  ;;  %v2754_v47 = vcombine.low %v2706_v3, %v3488_v43  ;;  %v3579_v49 = vld [vmem:[%s3093_s19 + $0x4c] sm:$0xf] }
  0x6e   : > { %v2746_v20 = vcombine.low %v2698_v16, %v3499_v55  ;;  %v475_v36 = vshll.u32 %v3554_v38, 16  ;;  %v714_v43 = vsel %vm696_vm0, %v712_v7, %v713_v1  ;;  %v2119_v55 = vrot.slane %v3521_v22, 1  ;;  %v283_v22 = vld [vmem:[%s3093_s19 + $0x30] sm:$0xe] }
  0x6f   : > { %757 = vrot.lane.b32.xlu0 %v717_v48, %s3044_s20  ;;  %v3534_v48 = vld [vmem:[%s3093_s19 + $0x94] sm:$0xf]  ;;  %v1974_v56 = vsel %vm423_vm1, %v1969_v18, %v1973_v45  ;;  %v2118_v59 = vrot.slane %v2754_v47, 1  ;;  %v253_v18 = vld [vmem:[%s3093_s19 + $0x84] sm:$0xf] }
  0x70   : > { %2027 = vrot.lane.b32.xlu1 %v1986_v15, %s3045_s21  ;;  %v736_v15 = vrot.slane %v2527_v27, 1  ;;  %v3548_v37 = vcombine.low %v255_v44, %v3534_v48  ;;  %v3567_v27 = vld [vmem:[%s3093_s19 + $0x38] ss:$0 sps:$4 sm:$0x11]   ;;  %v2669_v44 = vld [vmem:[%s3093_s19 + $0xa8] sm:$0xf] }
  0x71   : > { %v2094_v1 = vrot.slane %v2746_v20, 1  ;;  %v477_v16 = vrot.slane %v475_v36, 1  ;;  %v3601_v45 = vld [vmem:[%s3093_s19 + $0x88] sm:$0xf]  ;;  %v2120_v47 = vsel %vm696_vm0, %v2118_v59, %v2119_v55  ;;  %v2518_v55 = vcombine.low %v283_v22, %v3539_v52 }
  0x72   : > { %4211 = vst [vmem:[#allocation3_spill] sm:$0xff] %v3548_v37  ;;  %v738_v24 = vsel %vm696_vm0, %v736_v15, %v737_v62  ;;  %v571_v25 = vshll.u32 %v3548_v37, 16  ;;  %v569_v15 = vshrl.u32 %v3548_v37, 16 }
  0x73   : > { %2011 = vrot.lane.b32.xlu0 %v1890_v32, %s3045_s21  ;;  %v495_v32 = vsel %vm423_vm1, %v490_v63, %v494_v26  ;;  %v1877_v26 = vrot.slane %v1875_v9, 1  ;;  %v1873_v63 = vor.u32 %v1872_v13, %v1868_v29  ;;  %v480_v9 = vshll.u32 %v3567_v27, 16 }
  0x74   : > { %2155 = vrot.lane.b32.xlu1 %v2123_v58, %s3044_s20  ;;  %v3562_v58 = vld [vmem:[%s3093_s19 + $0x98] ss:$0 sps:$4 sm:$0x11]   ;;  %v573_v62 = vrot.slane %v571_v25, 1  ;;  %v3595_v29 = vcombine.low %v2653_v50, %v3579_v49  ;;  %v473_v13 = vshrl.u32 %v3554_v38, 16  ;;  %v3616_v50 = vcombine.low %v253_v18, %v3601_v45 }
  0x75   : > { %v576_v3 = vshll.u32 %v3562_v58, 16  ;;  %v3609_v25 = vld [vmem:[%s3093_s19 + $0x50] ss:$0 sps:$4 sm:$0x11]   ;;  %v482_v36 = vrot.slane %v480_v9, 1 }
  0x76   : > { %4214 = vst [vmem:[#allocation6_spill] sm:$0xff] %v3595_v29  ;;  %v574_v20 = vor.u32 %v573_v62, %v569_v15  ;;  %4215 = vst [vmem:[#allocation7_spill] sm:$0xff] %v3616_v50  ;;  %v478_v59 = vor.u32 %v477_v16, %v473_v13  ;;  %v237_v15 = vld [vmem:[%s3093_s19 + $0x24] sm:$0xf]  ;;  %v3622_v62 = vld [vmem:[%s3093_s19 + $0x28] sm:$0xf] }
  0x77   : > { %2139 = vrot.lane.b32.xlu0 %v2099_v10, %s3044_s20  ;;  %v3574_v10 = vld [vmem:[%s3093_s19 + $0xac] sm:$0xf]  ;;  %v1863_v9 = vshll.u32 %v3609_v25, 16  ;;  %v1856_v52 = vshrl.u32 %v3595_v29, 16  ;;  %v2705_v16 = vld [vmem:[%s3093_s19 + $0xa8] sm:$0xe]  ;;  %v3638_v18 = vcombine.low %v237_v15, %v3622_v62 }
  0x78   : > { %642 = vrot.lane.b32.xlu1 %v591_v54, %s3045_s21  ;;  %v2095_v54 = vrot.slane %v3527_v57, 1  ;;  %v3588_v7 = vcombine.low %v2669_v44, %v3574_v10  ;;  %v1878_v57 = vsel %vm423_vm1, %v1873_v63, %v1877_v26  ;;  %v578_v44 = vrot.slane %v576_v3, 1  ;;  %v3631_v13 = vld [vmem:[%s3093_s19 + $0x8c] ss:$0 sps:$4 sm:$0x11]  }
  0x79   : > { %v1858_v63 = vshll.u32 %v3595_v29, 16  ;;  %4216 = vst [vmem:[#allocation8_spill] sm:$0xff] %v3638_v18  ;;  %v2667_v38 = vld [vmem:[%s3093_s19 + $0x9c] sm:$0xf] }
  0x7a   : > { %4213 = vst [vmem:[#allocation5_spill] sm:$0xff] %v3588_v7 }
  0x7b   : > { %626 = vrot.lane.b32.xlu0 %v495_v32, %s3045_s21  ;;  %v291_v32 = vld [vmem:[%s3093_s19 + $0x90] sm:$0xe]  ;;  %v1860_v22 = vrot.slane %v1858_v63, 1  ;;  %v1865_v63 = vrot.slane %v1863_v9, 1 }
  0x7c   : > { %771 = vrot.lane.b32.xlu1 %v738_v24, %s3044_s20  ;;  %v3606_v24 = vld [vmem:[%s3093_s19 + $0xb0] ss:$0 sps:$4 sm:$0x11]   ;;  %v2526_v26 = vcombine.low %v291_v32, %v3534_v48  ;;  %v734_v48 = vrot.slane %v3562_v58, 1  ;;  %v579_v32 = vsel %vm423_vm1, %v574_v20, %v578_v44  ;;  %v559_v58 = vshll.u32 %v3616_v50, 16 }
  0x7d   : > { %v1959_v3 = vshll.u32 %v3606_v24, 16  ;;  %v709_v20 = vrot.slane %v2518_v55, 1  ;;  %v710_v44 = vrot.slane %v3567_v27, 1  ;;  %v3649_v27 = vld [vmem:[%s3093_s19 + $0x2c] ss:$0 sps:$4 sm:$0x11]  }
  0x7e   : > { %v290_v55 = vld [vmem:[%s3093_s19 + $0x84] sm:$0xe] }
  0x7f   : > { %755 = vrot.lane.b32.xlu0 %v714_v43, %s3044_s20  ;;  %v1954_v43 = vshll.u32 %v3588_v7, 16 }
  0x80   : > { %2025 = vrot.lane.b32.xlu1 %v1974_v56, %s3045_s21  ;;  %v2096_v56 = vsel %vm696_vm0, %v2094_v1, %v2095_v54  ;;  %v1952_v54 = vshrl.u32 %v3588_v7, 16 }
  0x81   : > { %v1956_v1 = vrot.slane %v1954_v43, 1  ;;  %v1961_v43 = vrot.slane %v1959_v3, 1  ;;  %v1861_v3 = vor.u32 %v1860_v22, %v1856_v52  ;;  %v2116_v52 = vrot.slane %v3606_v24, 1 }
  0x83   : > { %2009 = vrot.lane.b32.xlu0 %v1878_v57, %s3045_s21  ;;  %v733_v57 = vrot.slane %v2526_v26, 1  ;;  %v2697_v26 = vld [vmem:[%s3093_s19 + $0x48] sm:$0xe]  ;;  %v1957_v15 = vor.u32 %v1956_v1, %v1952_v54  ;;  %v2651_v54 = vld [vmem:[%s3093_s19 + $0x3c] sm:$0xf] }
  0x84   : > { %2153 = vrot.lane.b32.xlu1 %v2120_v47, %s3044_s20  ;;  %v483_v47 = vsel %vm423_vm1, %v478_v59, %v482_v36  ;;  %v2753_v36 = vcombine.low %v2705_v16, %v3574_v10  ;;  %v564_v59 = vshll.u32 %v3631_v13, 16  ;;  %v2745_v9 = vcombine.low %v2697_v26, %v3579_v49  ;;  %v3664_v1 = vld [vmem:[%s3093_s19 + $0x40] sm:$0xf] }
  0x85   : > { %v735_v7 = vsel %vm696_vm0, %v733_v57, %v734_v48  ;;  %v3657_v48 = vld [vmem:[%s3093_s19 + $0xa0] sm:$0xf]  ;;  %v711_v10 = vsel %vm696_vm0, %v709_v20, %v710_v44  ;;  %v2525_v49 = vcombine.low %v290_v55, %v3601_v45  ;;  %v1962_v22 = vsel %vm423_vm1, %v1957_v15, %v1961_v43  ;;  %v3686_v55 = vld [vmem:[%s3093_s19 + $0xa4] ss:$0 sps:$4 sm:$0x11]  }
  0x86   : > { %v2115_v16 = vrot.slane %v2753_v36, 1  ;;  %v3673_v26 = vcombine.low %v2667_v38, %v3657_v48  ;;  %v2091_v44 = vrot.slane %v2745_v9, 1  ;;  %v566_v37 = vrot.slane %v564_v59, 1  ;;  %v3693_v9 = vld [vmem:[%s3093_s19 + $0x44] ss:$0 sps:$4 sm:$0x11]  }
  0x87   : > { %2137 = vrot.lane.b32.xlu0 %v2096_v56, %s3044_s20  ;;  %v557_v56 = vshrl.u32 %v3616_v50, 16  ;;  %v463_v50 = vshll.u32 %v3638_v18, 16  ;;  %v3678_v45 = vcombine.low %v2651_v54, %v3664_v1  ;;  %v461_v43 = vshrl.u32 %v3638_v18, 16  ;;  %v3700_v54 = vld [vmem:[%s3093_s19 + $0x7c] sm:$0xf] }
  0x88   : > { %640 = vrot.lane.b32.xlu1 %v579_v32, %s3045_s21  ;;  %v561_v32 = vrot.slane %v559_v58, 1  ;;  %v2092_v58 = vrot.slane %v3609_v25, 1  ;;  %v468_v15 = vshll.u32 %v3649_v27, 16  ;;  %v730_v36 = vrot.slane %v2525_v49, 1  ;;  %v3710_v18 = vld [vmem:[%s3093_s19 + $0x1c] sm:$0xf] }
  0x89   : > { %v465_v25 = vrot.slane %v463_v50, 1  ;;  %v2117_v50 = vsel %vm696_vm0, %v2115_v16, %v2116_v52 }
  0x8a   : > { %v1375_v29 = vpop.permute.xlu1 %1374  ;;  %v562_v24 = vor.u32 %v561_v32, %v557_v56  ;;  %v470_v49 = vrot.slane %v468_v15, 1 }
  0x8b   : > { %624 = vrot.lane.b32.xlu0 %v483_v47, %s3045_s21  ;;  %v282_v47 = vld [vmem:[%s3093_s19 + $0x24] sm:$0xe]  ;;  %v466_v52 = vor.u32 %v465_v25, %v461_v43  ;;  %v2704_v43 = vld [vmem:[%s3093_s19 + $0x9c] sm:$0xe] }
  0x8c   : > { %v3659_v57 = vpop.permute.xlu0 %1372  ;;  %769 = vrot.lane.b32.xlu1 %v735_v7, %s3044_s20  ;;  %v1866_v7 = vsel %vm423_vm1, %v1861_v3, %v1865_v63  ;;  %v731_v63 = vrot.slane %v3631_v13, 1  ;;  %v2517_v59 = vcombine.low %v282_v47, %v3622_v62  ;;  %v1942_v3 = vshll.u32 %v3673_v26, 16  ;;  %v251_v13 = vld [vmem:[%s3093_s19 + $0x78] sm:$0xf] }
  0x8d   : > { %v1846_v62 = vshll.u32 %v3678_v45, 16  ;;  %v3717_v25 = vcombine.low %v251_v13, %v3700_v54 }
  0x8e   : > { %v1391_v20 = vpop.permute.xlu1 %1390 }
  0x8f   : > { %753 = vrot.lane.b32.xlu0 %v711_v10, %s3044_s20  ;;  %v2093_v10 = vsel %vm696_vm0, %v2091_v44, %v2092_v58  ;;  %v732_v58 = vsel %vm696_vm0, %v730_v36, %v731_v63  ;;  %v1947_v44 = vshll.u32 %v3686_v55, 16  ;;  %v1844_v36 = vshrl.u32 %v3678_v45, 16 }
  0x90   : > { %2023 = vrot.lane.b32.xlu1 %v1962_v22, %s3045_s21  ;;  %v707_v22 = vrot.slane %v3649_v27, 1  ;;  %v1944_v27 = vrot.slane %v1942_v3, 1  ;;  %v1848_v63 = vrot.slane %v1846_v62, 1  ;;  %v471_v3 = vsel %vm423_vm1, %v466_v52, %v470_v49 }
  0x91   : > { %v1247_v38 = vpop.permute.xlu0 %1246  ;;  %v1949_v13 = vrot.slane %v1947_v44, 1  ;;  %v3746_v44 = vld [vmem:[%s3093_s19 + $0x94] sm:$0xf] }
  0x92   : > { %v1407_v56 = vsel %vm777_vm2, %v3099_v5, %v1247_v38  ;;  %v1389_v32 = vpop.permute.xlu1 %1388  ;;  %v567_v5 = vsel %vm423_vm1, %v562_v24, %v566_v37  ;;  %v235_v38 = vld [vmem:[%s3093_s19 + $0x18] sm:$0xf]  ;;  %v1940_v24 = vshrl.u32 %v3673_v26, 16 }
  0x93   : > { %2007 = vrot.lane.b32.xlu0 %v1866_v7, %s3045_s21  ;;  %v1439_v47 = vsel %vm810_vm3, %v1407_v56, %v1375_v29  ;;  %v706_v7 = vrot.slane %v2517_v59, 1  ;;  %v1851_v59 = vshll.u32 %v3693_v9, 16  ;;  %v2696_v56 = vld [vmem:[%s3093_s19 + $0x3c] sm:$0xe] }
  0x94   : > { %2151 = vrot.lane.b32.xlu1 %v2117_v50, %s3044_s20  ;;  %v1476_v50 = vsel %vm1458_vm4, %v1439_v47, 0  ;;  %v3737_v47 = vld [vmem:[%s3093_s19 + $0x80] ss:$0 sps:$4 sm:$0x11]   ;;  %v1945_v49 = vor.u32 %v1944_v27, %v1940_v24  ;;  %v2649_v27 = vld [vmem:[%s3093_s19 + $0x30] sm:$0xf] }
  0x95   : > { %v1263_v16 = vpop.permute.xlu0 %1262 }
  0x96   : > { %v1423_v37 = vsel %vm777_vm2, %v3112_v21, %v1263_v16  ;;  %v1261_v15 = vpop.permute.xlu1 %1260  ;;  %v2752_v16 = vcombine.low %v2704_v43, %v3657_v48  ;;  %v3750_v43 = vld [vmem:[%s3093_s19 + $0x20] ss:$0 sps:$4 sm:$0x11]  }
  0x97   : > { %2135 = vrot.lane.b32.xlu0 %v2093_v10, %s3044_s20  ;;  %v1455_v29 = vsel %vm810_vm3, %v1423_v37, %v1391_v20  ;;  %v1421_v21 = vsel %vm777_vm2, %v3122_v34, %v1261_v15  ;;  %v3730_v20 = vcombine.low %v235_v38, %v3710_v18  ;;  %v2113_v34 = vrot.slane %v3686_v55, 1  ;;  %v2665_v38 = vld [vmem:[%s3093_s19 + $0x90] sm:$0xf] }
  0x98   : > { %2818 = vmatprep.subr.msk.bf16.mxu0 %vm1458_vm4, %v1455_v29  ;;  %638 = vrot.lane.b32.xlu1 %v567_v5, %s3045_s21  ;;  %v1453_v62 = vsel %vm810_vm3, %v1421_v21, %v1389_v32  ;;  %v2744_v5 = vcombine.low %v2696_v56, %v3664_v1  ;;  %v547_v32 = vshll.u32 %v3717_v25, 16  ;;  %v1849_v55 = vor.u32 %v1848_v63, %v1844_v36  ;;  %v3757_v1 = vld [vmem:[%s3093_s19 + $0x34] sm:$0xf] }
  0x99   : > { %2765 = vmatpush3.bf16.xpose.msra.mxu0 %v1476_v50  ;;  %v1245_v10 = vpop.permute.xlu0 %1244  ;;  %v1853_v37 = vrot.slane %v1851_v59, 1  ;;  %v2089_v29 = vrot.slane %v3693_v9, 1  ;;  %v451_v24 = vshll.u32 %v3730_v20, 16  ;;  %v2112_v63 = vrot.slane %v2752_v16, 1 }
  0x9a   : > { %v1405_v52 = vsel %vm777_vm2, %v3108_v19, %v1245_v10  ;;  %2819 = vmatprep.subr.msk.bf16.mxu0 %vm1458_vm4, %v1453_v62  ;;  %v1259_v48 = vpop.permute.xlu1 %1258  ;;  %v708_v19 = vsel %vm696_vm0, %v706_v7, %v707_v22  ;;  %v552_v59 = vshll.u32 %v3737_v47, 16  ;;  %v3764_v22 = vcombine.low %v2665_v38, %v3746_v44  ;;  %v289_v10 = vld [vmem:[%s3093_s19 + $0x78] sm:$0xe] }
  0x9b   : > { %622 = vrot.lane.b32.xlu0 %v471_v3, %s3045_s21  ;;  %v1437_v36 = vsel %vm810_vm3, %v1405_v52, %v3659_v57  ;;  %v1950_v9 = vsel %vm423_vm1, %v1945_v49, %v1949_v13  ;;  %v2088_v7 = vrot.slane %v2744_v5, 1  ;;  %v545_v56 = vshrl.u32 %v3717_v25, 16  ;;  %v281_v62 = vld [vmem:[%s3093_s19 + $0x18] sm:$0xe] }
  0x9c   : > { %767 = vrot.lane.b32.xlu1 %v732_v58, %s3044_s20  ;;  %v549_v21 = vrot.slane %v547_v32, 1  ;;  %v1419_v50 = vsel %vm777_vm2, %v3140_v61, %v1259_v48  ;;  %v1854_v57 = vsel %vm423_vm1, %v1849_v55, %v1853_v37  ;;  %v449_v3 = vshrl.u32 %v3730_v20, 16  ;;  %v3782_v5 = vld [vmem:[%s3093_s19 + $0x98] ss:$0 sps:$4 sm:$0x11]  }
  0x9d   : > { %v1243_v15 = vpop.permute.xlu0 %1242  ;;  %v3776_v13 = vcombine.low %v2649_v27, %v3757_v1  ;;  %v1474_v52 = vsel %vm1458_vm4, %v1437_v36, 0  ;;  %v453_v49 = vrot.slane %v451_v24, 1  ;;  %v456_v61 = vshll.u32 %v3750_v43, 16  ;;  %v3788_v37 = vld [vmem:[%s3093_s19 + $0x38] ss:$0 sps:$4 sm:$0x11]  }
  0x9e   : > { %v1387_v58 = vpop.permute.xlu1 %1386  ;;  %v554_v38 = vrot.slane %v552_v59, 1  ;;  %v728_v48 = vrot.slane %v3737_v47, 1  ;;  %v1930_v55 = vshll.u32 %v3764_v22, 16  ;;  %v550_v24 = vor.u32 %v549_v21, %v545_v56 }
  0x9f   : > { %751 = vrot.lane.b32.xlu0 %v708_v19, %s3044_s20  ;;  %v1451_v16 = vsel %vm810_vm3, %v1419_v50, %v1387_v58  ;;  %v2114_v19 = vsel %vm696_vm0, %v2112_v63, %v2113_v34  ;;  %v2524_v27 = vcombine.low %v289_v10, %v3700_v54  ;;  %v2516_v36 = vcombine.low %v281_v62, %v3710_v18  ;;  %v249_v50 = vld [vmem:[%s3093_s19 + $0x6c] sm:$0xf]  ;;  %v3804_v34 = vld [vmem:[%s3093_s19 + $0x10] sm:$0xf] }
  0xa0   : > { %2021 = vrot.lane.b32.xlu1 %v1950_v9, %s3045_s21  ;;  %v3796_v9 = vld [vmem:[%s3093_s19 + $0x70] sm:$0xf]  ;;  %v2090_v59 = vsel %vm696_vm0, %v2088_v7, %v2089_v29  ;;  %v704_v58 = vrot.slane %v3750_v43, 1  ;;  %v1403_v54 = vsel %vm777_vm2, %v3148_v8, %v1243_v15  ;;  %v454_v18 = vor.u32 %v453_v49, %v449_v3 }
  0xa1   : > { %2767 = vmatpush3.bf16.xpose.msra.mxu0 %v1474_v52  ;;  %v1371_v32 = vpop.permute.xlu0 %1370  ;;  %v233_v52 = vld [vmem:[%s3093_s19 + $0xc] sm:$0xf]  ;;  %v458_v63 = vrot.slane %v456_v61, 1  ;;  %v1928_v56 = vshrl.u32 %v3764_v22, 16  ;;  %v1932_v29 = vrot.slane %v1930_v55, 1  ;;  %v1935_v43 = vshll.u32 %v3782_v5, 16 }
  0xa2   : > { %2820 = vmatprep.subr.msk.bf16.mxu0 %vm1458_vm4, %v1451_v16  ;;  %v1257_v47 = vpop.permute.xlu1 %1256  ;;  %v1834_v16 = vshll.u32 %v3776_v13, 16  ;;  %v1435_v21 = vsel %vm810_vm3, %v1403_v54, %v1371_v32  ;;  %v2703_v7 = vld [vmem:[%s3093_s19 + $0x90] sm:$0xe]  ;;  %v3814_v10 = vcombine.low %v249_v50, %v3796_v9  ;;  %v555_v8 = vsel %vm423_vm1, %v550_v24, %v554_v38 }
  0xa3   : > { %2005 = vrot.lane.b32.xlu0 %v1854_v57, %s3045_s21  ;;  %v727_v15 = vrot.slane %v2524_v27, 1  ;;  %v703_v3 = vrot.slane %v2516_v36, 1  ;;  %v3818_v62 = vcombine.low %v233_v52, %v3804_v34  ;;  %v1417_v49 = vsel %vm777_vm2, %v3165_v35, %v1257_v47  ;;  %v2695_v50 = vld [vmem:[%s3093_s19 + $0x30] sm:$0xe] }
  0xa4   : > { %2149 = vrot.lane.b32.xlu1 %v2114_v19, %s3044_s20  ;;  %v1832_v32 = vshrl.u32 %v3776_v13, 16  ;;  %v1836_v55 = vrot.slane %v1834_v16, 1  ;;  %v1839_v19 = vshll.u32 %v3788_v37, 16  ;;  %v1472_v24 = vsel %vm1458_vm4, %v1435_v21, 0 }
  0xa5   : > { %v1241_v57 = vpop.permute.xlu0 %1240  ;;  %v459_v27 = vsel %vm423_vm1, %v454_v18, %v458_v63  ;;  %v2751_v36 = vcombine.low %v2703_v7, %v3746_v44  ;;  %v3831_v52 = vld [vmem:[%s3093_s19 + $0x74] ss:$0 sps:$4 sm:$0x11]   ;;  %v1933_v47 = vor.u32 %v1932_v29, %v1928_v56  ;;  %v535_v16 = vshll.u32 %v3814_v10, 16 }
  0xa6   : > { %v1385_v61 = vpop.permute.xlu1 %1384  ;;  %v729_v54 = vsel %vm696_vm0, %v727_v15, %v728_v48  ;;  %v3838_v18 = vld [vmem:[%s3093_s19 + $0x14] ss:$0 sps:$4 sm:$0x11]   ;;  %v439_v44 = vshll.u32 %v3818_v62, 16  ;;  %v1837_v21 = vor.u32 %v1836_v55, %v1832_v32  ;;  %v1841_v7 = vrot.slane %v1839_v19, 1 }
  0xa7   : > { %2133 = vrot.lane.b32.xlu0 %v2090_v59, %s3044_s20  ;;  %v1449_v38 = vsel %vm810_vm3, %v1417_v49, %v1385_v61  ;;  %v1937_v59 = vrot.slane %v1935_v43, 1  ;;  %v2110_v56 = vrot.slane %v3782_v5, 1  ;;  %v2743_v29 = vcombine.low %v2695_v50, %v3757_v1  ;;  %v2663_v43 = vld [vmem:[%s3093_s19 + $0x84] sm:$0xf]  ;;  %v280_v32 = vld [vmem:[%s3093_s19 + $0xc] sm:$0xe] }
  0xa8   : > { %636 = vrot.lane.b32.xlu1 %v555_v8, %s3045_s21  ;;  %v3846_v8 = vld [vmem:[%s3093_s19 + $0x88] sm:$0xf]  ;;  %v1401_v48 = vsel %vm777_vm2, %v3170_v40, %v1241_v57  ;;  %v705_v15 = vsel %vm696_vm0, %v703_v3, %v704_v58  ;;  %v2109_v49 = vrot.slane %v2751_v36, 1  ;;  %v540_v61 = vshll.u32 %v3831_v52, 16  ;;  %v3870_v36 = vld [vmem:[%s4202_s1 + $0x4] sm:$0xf] }
  0xa9   : > { %2769 = vmatpush3.bf16.xpose.msra.mxu0 %v1472_v24  ;;  %v1369_v35 = vpop.permute.xlu0 %1368  ;;  %v1938_v1 = vsel %vm423_vm1, %v1933_v47, %v1937_v59  ;;  %v533_v19 = vshrl.u32 %v3814_v10, 16  ;;  %v537_v50 = vrot.slane %v535_v16, 1  ;;  %v2647_v24 = vld [vmem:[%s3093_s19 + $0x24] sm:$0xf]  ;;  %v437_v40 = vshrl.u32 %v3818_v62, 16  ;;  %2780 = vmatprep.mubr.msk.bf16.mxu0 %vm1458_vm4, %v3870_v36 }
  0xaa   : > { %2821 = vmatprep.subr.msk.bf16.mxu0 %vm1458_vm4, %v1449_v38  ;;  %v1255_v63 = vpop.permute.xlu1 %1254  ;;  %v288_v38 = vld [vmem:[%s3093_s19 + $0x6c] sm:$0xe]  ;;  %v1433_v55 = vsel %vm810_vm3, %v1401_v48, %v1369_v35  ;;  %v441_v58 = vrot.slane %v439_v44, 1  ;;  %v444_v57 = vshll.u32 %v3838_v18, 16  ;;  %v3865_v3 = vcombine.low %v2663_v43, %v3846_v8 }
  0xab   : > { %620 = vrot.lane.b32.xlu0 %v459_v27, %s3045_s21  ;;  %v3860_v27 = vld [vmem:[%s3093_s19 + $0x28] sm:$0xf]  ;;  %v1415_v35 = vsel %vm777_vm2, %v3186_v60, %v1255_v63  ;;  %v1842_v59 = vsel %vm423_vm1, %v1837_v21, %v1841_v7  ;;  %v2085_v16 = vrot.slane %v2743_v29, 1  ;;  %v1470_v43 = vsel %vm1458_vm4, %v1433_v55, 0 }
  0xac   : > { %765 = vrot.lane.b32.xlu1 %v729_v54, %s3044_s20  ;;  %v2086_v54 = vrot.slane %v3788_v37, 1  ;;  %v2523_v48 = vcombine.low %v288_v38, %v3796_v9  ;;  %v3883_v60 = vcombine.low %v2647_v24, %v3860_v27  ;;  %v538_v37 = vor.u32 %v537_v50, %v533_v19  ;;  %v3888_v29 = vld [vmem:[%s3093_s19 + $0x8c] ss:$0 sps:$4 sm:$0x11]   ;;  %v3901_v19 = vld [vmem:[%s3093_s19 + $0x64] sm:$0xf] }
  0xad   : > { %v1239_v5 = vpop.permute.xlu0 %1238  ;;  %v542_v21 = vrot.slane %v540_v61, 1  ;;  %v2515_v7 = vcombine.low %v280_v32, %v3804_v34  ;;  %v2111_v9 = vsel %vm696_vm0, %v2109_v49, %v2110_v56  ;;  %v446_v38 = vrot.slane %v444_v57, 1  ;;  %v3894_v24 = vld [vmem:[%s3093_s19 + $0x2c] ss:$0 sps:$4 sm:$0x11]  }
  0xae   : > { %v1383_v47 = vpop.permute.xlu1 %1382  ;;  %v1918_v55 = vshll.u32 %v3865_v3, 16  ;;  %v725_v61 = vrot.slane %v3831_v52, 1  ;;  %v701_v34 = vrot.slane %v3838_v18, 1  ;;  %v247_v32 = vld [vmem:[%s3093_s19 + $0x60] sm:$0xf]  ;;  %v1399_v56 = vsel %vm777_vm2, %v3200_v12, %v1239_v5 }
  0xaf   : > { %749 = vrot.lane.b32.xlu0 %v705_v15, %s3044_s20  ;;  %v1447_v44 = vsel %vm810_vm3, %v1415_v35, %v1383_v47  ;;  %v442_v15 = vor.u32 %v441_v58, %v437_v40  ;;  %v2087_v49 = vsel %vm696_vm0, %v2085_v16, %v2086_v54  ;;  %v724_v50 = vrot.slane %v2523_v48, 1  ;;  %v231_v58 = vld [vmem:[%s3093_s19] sm:$0xf]  ;;  %v3909_v57 = vld [vmem:[%s3093_s19 + $0x4] sm:$0xf] }
  0xb0   : > { %2019 = vrot.lane.b32.xlu1 %v1938_v1, %s3045_s21  ;;  %v1822_v40 = vshll.u32 %v3883_v60, 16  ;;  %v543_v18 = vsel %vm423_vm1, %v538_v37, %v542_v21  ;;  %v700_v47 = vrot.slane %v2515_v7, 1  ;;  %v2702_v12 = vld [vmem:[%s3093_s19 + $0x84] sm:$0xe]  ;;  %v1916_v16 = vshrl.u32 %v3865_v3, 16 }
  0xb1   : > { %2771 = vmatpush3.bf16.xpose.msra.mxu0 %v1470_v43  ;;  %v1367_v63 = vpop.permute.xlu0 %1366  ;;  %v447_v5 = vsel %vm423_vm1, %v442_v15, %v446_v38  ;;  %v1920_v54 = vrot.slane %v1918_v55, 1  ;;  %v3920_v43 = vcombine.low %v247_v32, %v3901_v19  ;;  %v1820_v37 = vshrl.u32 %v3883_v60, 16  ;;  %v3936_v32 = vld [vmem:[%s3093_s19 + $0x68] ss:$0 sps:$4 sm:$0x11]  }
  0xb2   : > { %2822 = vmatprep.subr.msk.bf16.mxu0 %vm1458_vm4, %v1447_v44  ;;  %v1253_v1 = vpop.permute.xlu1 %1252  ;;  %v1431_v52 = vsel %vm810_vm3, %v1399_v56, %v1367_v63  ;;  %v2694_v44 = vld [vmem:[%s3093_s19 + $0x24] sm:$0xe]  ;;  %v1827_v21 = vshll.u32 %v3894_v24, 16  ;;  %v3928_v7 = vcombine.low %v231_v58, %v3909_v57  ;;  %v1824_v38 = vrot.slane %v1822_v40, 1 }
  0xb3   : > { %2003 = vrot.lane.b32.xlu0 %v1842_v59, %s3045_s21  ;;  %v1923_v59 = vshll.u32 %v3888_v29, 16  ;;  %v1413_v48 = vsel %vm777_vm2, %v3217_v33, %v1253_v1  ;;  %v1468_v15 = vsel %vm1458_vm4, %v1431_v52, 0  ;;  %v2750_v55 = vcombine.low %v2702_v12, %v3846_v8  ;;  %v3945_v12 = vld [vmem:[%s3093_s19 + $0x8] ss:$0 sps:$4 sm:$0x11]  }
  0xb4   : > { %2147 = vrot.lane.b32.xlu1 %v2111_v9, %s3044_s20  ;;  %v2742_v1 = vcombine.low %v2694_v44, %v3860_v27  ;;  %v726_v56 = vsel %vm696_vm0, %v724_v50, %v725_v61  ;;  %v523_v40 = vshll.u32 %v3920_v43, 16  ;;  %v702_v52 = vsel %vm696_vm0, %v700_v47, %v701_v34 }
  0xb5   : > { %v1237_v35 = vpop.permute.xlu0 %1236  ;;  %v1925_v58 = vrot.slane %v1923_v59, 1  ;;  %v2107_v27 = vrot.slane %v3888_v29, 1  ;;  %v427_v44 = vshll.u32 %v3928_v7, 16  ;;  %v1825_v50 = vor.u32 %v1824_v38, %v1820_v37 }
  0xb6   : > { %v1381_v63 = vpop.permute.xlu1 %1380  ;;  %v1397_v61 = vsel %vm777_vm2, %v3234_v51, %v1237_v35  ;;  %v2106_v59 = vrot.slane %v2750_v55, 1  ;;  %v2082_v29 = vrot.slane %v2742_v1, 1  ;;  %v521_v35 = vshrl.u32 %v3920_v43, 16  ;;  %v279_v1 = vld [vmem:[%s3093_s19] sm:$0xe] }
  0xb7   : > { %2131 = vrot.lane.b32.xlu0 %v2087_v49, %s3044_s20  ;;  %v1445_v9 = vsel %vm810_vm3, %v1413_v48, %v1381_v63  ;;  %v1921_v49 = vor.u32 %v1920_v54, %v1916_v16  ;;  %v2661_v16 = vld [vmem:[%s3093_s19 + $0x78] sm:$0xf]  ;;  %v3953_v54 = vld [vmem:[%s3093_s19 + $0x7c] sm:$0xf]  ;;  %v528_v48 = vshll.u32 %v3936_v32, 16  ;;  %v425_v37 = vshrl.u32 %v3928_v7, 16 }
  0xb8   : > { %634 = vrot.lane.b32.xlu1 %v543_v18, %s3045_s21  ;;  %v1829_v18 = vrot.slane %v1827_v21, 1  ;;  %v2645_v63 = vld [vmem:[%s3093_s19 + $0x18] sm:$0xf]  ;;  %v3960_v21 = vld [vmem:[%s3093_s19 + $0x1c] sm:$0xf]  ;;  %v429_v55 = vrot.slane %v427_v44, 1 }
  0xb9   : > { %2773 = vmatpush3.bf16.xpose.msra.mxu0 %v1468_v15  ;;  %v1365_v33 = vpop.permute.xlu0 %1364  ;;  %v1926_v51 = vsel %vm423_vm1, %v1921_v49, %v1925_v58 }
  0xba   : > { %2823 = vmatprep.subr.msk.bf16.mxu0 %vm1458_vm4, %v1445_v9  ;;  %v1251_v8 = vpop.permute.xlu1 %1250  ;;  %v1429_v34 = vsel %vm810_vm3, %v1397_v61, %v1365_v33  ;;  %v287_v9 = vld [vmem:[%s3093_s19 + $0x60] sm:$0xe]  ;;  %v432_v33 = vshll.u32 %v3945_v12, 16  ;;  %v3978_v61 = vcombine.low %v2645_v63, %v3960_v21 }
  0xbb   : > { %618 = vrot.lane.b32.xlu0 %v447_v5, %s3045_s21  ;;  %v2083_v5 = vrot.slane %v3894_v24, 1  ;;  %v525_v24 = vrot.slane %v523_v40, 1  ;;  %v1411_v15 = vsel %vm777_vm2, %v3246_v0, %v1251_v8  ;;  %v1466_v58 = vsel %vm1458_vm4, %v1429_v34, 0 }
  0xbc   : > { %763 = vrot.lane.b32.xlu1 %v726_v56, %s3044_s20  ;;  %v3972_v56 = vcombine.low %v2661_v16, %v3953_v54  ;;  %v1830_v40 = vsel %vm423_vm1, %v1825_v50, %v1829_v18  ;;  %v2522_v8 = vcombine.low %v287_v9, %v3901_v19  ;;  %v530_v16 = vrot.slane %v528_v48, 1  ;;  %v3994_v9 = vld [vmem:[%s3093_s19 + $0x20] ss:$0 sps:$4 sm:$0x11]  }
  0xbd   : > { %v1235_v47 = vpop.permute.xlu0 %1234  ;;  %v526_v44 = vor.u32 %v525_v24, %v521_v35  ;;  %v2514_v34 = vcombine.low %v279_v1, %v3909_v57  ;;  %v430_v50 = vor.u32 %v429_v55, %v425_v37  ;;  %v434_v63 = vrot.slane %v432_v33, 1 }
  0xbe   : > { %v1379_v38 = vpop.permute.xlu1 %1378  ;;  %v1395_v19 = vsel %vm777_vm2, %v3258_v17, %v1235_v47  ;;  %v721_v48 = vrot.slane %v2522_v8, 1  ;;  %v722_v35 = vrot.slane %v3936_v32, 1  ;;  %v698_v24 = vrot.slane %v3945_v12, 1 }
  0xbf   : > { %747 = vrot.lane.b32.xlu0 %v702_v52, %s3044_s20  ;;  %v1443_v49 = vsel %vm810_vm3, %v1411_v15, %v1379_v38  ;;  %v2108_v52 = vsel %vm696_vm0, %v2106_v59, %v2107_v27  ;;  %v3986_v15 = vld [vmem:[%s3093_s19 + $0x80] ss:$0 sps:$4 sm:$0x11]   ;;  %v1906_v38 = vshll.u32 %v3972_v56, 16  ;;  %v1810_v27 = vshll.u32 %v3978_v61, 16 }
  0xc0   : > { %2017 = vrot.lane.b32.xlu1 %v1926_v51, %s3045_s21  ;;  %v2084_v51 = vsel %vm696_vm0, %v2082_v29, %v2083_v5  ;;  %v531_v37 = vsel %vm423_vm1, %v526_v44, %v530_v16  ;;  %v697_v17 = vrot.slane %v2514_v34, 1  ;;  %v1904_v5 = vshrl.u32 %v3972_v56, 16 }
  0xc1   : > { %2775 = vmatpush3.bf16.xpose.msra.mxu0 %v1466_v58  ;;  %v1363_v0 = vpop.permute.xlu0 %1362  ;;  %v1911_v47 = vshll.u32 %v3986_v15, 16  ;;  %v435_v33 = vsel %vm423_vm1, %v430_v50, %v434_v63  ;;  %v1908_v32 = vrot.slane %v1906_v38, 1  ;;  %v1808_v1 = vshrl.u32 %v3978_v61, 16 }
  0xc2   : > { %2824 = vmatprep.subr.msk.bf16.mxu0 %vm1458_vm4, %v1443_v49  ;;  %v1249_v18 = vpop.permute.xlu1 %1248  ;;  %v1427_v57 = vsel %vm810_vm3, %v1395_v19, %v1363_v0  ;;  %v1812_v58 = vrot.slane %v1810_v27, 1  ;;  %v2701_v0 = vld [vmem:[%s3093_s19 + $0x78] sm:$0xe]  ;;  %v723_v44 = vsel %vm696_vm0, %v721_v48, %v722_v35  ;;  %v699_v34 = vsel %vm696_vm0, %v697_v17, %v698_v24 }
  0xc3   : > { %2001 = vrot.lane.b32.xlu0 %v1830_v40, %s3045_s21  ;;  %v1409_v29 = vsel %vm777_vm2, %v3277_v41, %v1249_v18  ;;  %v1464_v49 = vsel %vm1458_vm4, %v1427_v57, 0  ;;  %v1815_v40 = vshll.u32 %v3994_v9, 16  ;;  %v2693_v41 = vld [vmem:[%s3093_s19 + $0x18] sm:$0xe]  ;;  %v1909_v18 = vor.u32 %v1908_v32, %v1904_v5 }
  0xc4   : > { %2145 = vrot.lane.b32.xlu1 %v2108_v52, %s3044_s20  ;;  %v4018_v52 = vld [vmem:[%s4202_s1] sm:$0xf]  ;;  %v1913_v50 = vrot.slane %v1911_v47, 1  ;;  %v2749_v63 = vcombine.low %v2701_v0, %v3953_v54  ;;  %v1813_v19 = vor.u32 %v1812_v58, %v1808_v1  ;;  %v2741_v27 = vcombine.low %v2693_v41, %v3960_v21 }
  0xc5   : > { %v1233_v59 = vpop.permute.xlu0 %1232  ;;  %2798 = vmatprep.mubr.msk.bf16.mxu1 %vm1458_vm4, %v4018_v52  ;;  %v2104_v35 = vrot.slane %v3986_v15, 1 }
  0xc6   : > { %v1377_v55 = vpop.permute.xlu1 %1376  ;;  %v1393_v38 = vsel %vm777_vm2, %v3289_v53, %v1233_v59  ;;  %v2103_v53 = vrot.slane %v2749_v63, 1  ;;  %v2080_v59 = vrot.slane %v3994_v9, 1  ;;  %v2079_v47 = vrot.slane %v2741_v27, 1 }
  0xc7   : > { %2129 = vrot.lane.b32.xlu0 %v2084_v51, %s3044_s20  ;;  %v1441_v12 = vsel %vm810_vm3, %v1409_v29, %v1377_v55  ;;  %v1817_v51 = vrot.slane %v1815_v40, 1 }
  0xc8   : > { %632 = vrot.lane.b32.xlu1 %v531_v37, %s3045_s21  ;;  %v1914_v37 = vsel %vm423_vm1, %v1909_v18, %v1913_v50  ;;  %v2081_v32 = vsel %vm696_vm0, %v2079_v47, %v2080_v59 }
  0xc9   : > { %2777 = vmatpush3.bf16.xpose.msra.mxu0 %v1464_v49  ;;  %v1361_v8 = vpop.permute.xlu0 %1360  ;;  %v1818_v5 = vsel %vm423_vm1, %v1813_v19, %v1817_v51 }
  0xca   : > { %2825 = vmatprep.subr.msk.bf16.mxu0 %vm1458_vm4, %v1441_v12  ;;  %v647_v16 = vpop.permute.xlu1 %646  ;;  %v1425_v57 = vsel %vm810_vm3, %v1393_v38, %v1361_v8 }
  0xcb   : > { %616 = vrot.lane.b32.xlu0 %v435_v33, %s3045_s21  ;;  %v809_v24 = vsel %vm777_vm2, %v3310_v14, %v647_v16  ;;  %v1462_v21 = vsel %vm1458_vm4, %v1425_v57, 0  ;;  %v2105_v33 = vsel %vm696_vm0, %v2103_v53, %v2104_v35 }
  0xcc   : > { %761 = vrot.lane.b32.xlu1 %v723_v44, %s3044_s20 }
  0xcd   : > { %v631_v48 = vpop.permute.xlu0 %630 }
  0xce   : > { %v776_v54 = vpop.permute.xlu1 %775  ;;  %v793_v15 = vsel %vm777_vm2, %v3325_v28, %v631_v48  ;;  %v4054_v28 = vld [vmem:[%s4202_s1 + $0x8] sm:$0xf] }
  0xcf   : > { %745 = vrot.lane.b32.xlu0 %v699_v34, %s3044_s20  ;;  %v842_v17 = vsel %vm810_vm3, %v809_v24, %v776_v54 }
  0xd0   : > { %2826 = vmatprep.subr.msk.bf16.mxu1 %vm1458_vm4, %v842_v17  ;;  %2015 = vrot.lane.b32.xlu1 %v1914_v37, %s3045_s21 }
  0xd1   : > { %2779 = vmatpush3.bf16.xpose.msra.mxu0 %v1462_v21  ;;  %v760_v14 = vpop.permute.xlu0 %759 }
  0xd2   : > { %v826_v29 = vsel %vm810_vm3, %v793_v15, %v760_v14  ;;  %v2030_v55 = vpop.permute.xlu1 %2029 }
  0xd3   : > { %1999 = vrot.lane.b32.xlu0 %v1818_v5, %s3045_s21  ;;  %v1552_v9 = vsel %vm1458_vm4, %v826_v29, 0  ;;  %v2190_v12 = vsel %vm777_vm2, %v3341_v46, %v2030_v55 }
  0xd4   : > { %2783 = vmatpush3.bf16.xpose.msra.mxu1 %v1552_v9  ;;  %2143 = vrot.lane.b32.xlu1 %v2105_v33, %s3044_s20 }
  0xd5   : > { %v2014_v1 = vpop.permute.xlu0 %2013 }
  0xd6   : > { %v2158_v49 = vpop.permute.xlu1 %2157  ;;  %v2174_v40 = vsel %vm777_vm2, %v3357_v2, %v2014_v1  ;;  %v4217_v1 = vld [vmem:[#allocation3_spill] sm:$0xff] }
  0xd7   : > { %2127 = vrot.lane.b32.xlu0 %v2081_v32, %s3044_s20  ;;  %v2222_v58 = vsel %vm810_vm3, %v2190_v12, %v2158_v49 }
  0xd8   : > { %2781 = vmatmul.mubr.msk.bf16.vlgmr.msra.gmra.mxu0 %vm1458_vm4, %v3870_v36  ;;  %2834 = vmatprep.subr.msk.bf16.mxu0 %vm1458_vm4, %v2222_v58  ;;  %v4218_v58 = vld [vmem:[#allocation4_spill] sm:$0xff] }
  0xd9   : > { %v2142_v0 = vpop.permute.xlu0 %2141  ;;  %2816 = vmatprep.mubr.msk.bf16.mxu0 %vm1458_vm4, %v4054_v28 }
  0xda   : > { %v2206_v8 = vsel %vm810_vm3, %v2174_v40, %v2142_v0  ;;  %v645_v41 = vpop.permute.xlu1 %644 }
  0xdb   : > { %v2242_v46 = vsel %vm1458_vm4, %v2206_v8, 0  ;;  %v807_v16 = vsel %vm777_vm2, %v3385_v31, %v645_v41 }
  0xdc   : > { %2801 = vmatpush3.bf16.xpose.msra.mxu0 %v2242_v46 }
  0xdd   : > { %v629_v44 = vpop.permute.xlu0 %628 }
  0xde   : > { %v774_v36 = vpop.permute.xlu1 %773  ;;  %v791_v2 = vsel %vm777_vm2, %v3393_v42, %v629_v44  ;;  %v4219_v44 = vld [vmem:[#allocation5_spill] sm:$0xff] }
  0xdf   : > { %v840_v34 = vsel %vm810_vm3, %v807_v16, %v774_v36 }
  0xe0   : > { %2827 = vmatprep.subr.msk.bf16.mxu1 %vm1458_vm4, %v840_v34 }
  0xe1   : > { %v758_v18 = vpop.permute.xlu0 %757 }
  0xe2   : > { %v824_v50 = vsel %vm810_vm3, %v791_v2, %v758_v18  ;;  %v2028_v38 = vpop.permute.xlu1 %2027  ;;  %v4220_v2 = vld [vmem:[#allocation6_spill] sm:$0xff] }
  0xe3   : > { %v1550_v63 = vsel %vm1458_vm4, %v824_v50, 0  ;;  %v2188_v51 = vsel %vm777_vm2, %v3427_v23, %v2028_v38 }
  0xe4   : > { %2785 = vmatpush3.bf16.xpose.msra.mxu1 %v1550_v63 }
  0xe5   : > { %v2012_v19 = vpop.permute.xlu0 %2011 }
  0xe6   : > { %v2156_v31 = vpop.permute.xlu1 %2155  ;;  %v2172_v57 = vsel %vm777_vm2, %v3437_v30, %v2012_v19 }
  0xe7   : > { %v2220_v27 = vsel %vm810_vm3, %v2188_v51, %v2156_v31  ;;  %v4221_v31 = vld [vmem:[#allocation7_spill] sm:$0xff] }
  0xe8   : > { %2835 = vmatprep.subr.msk.bf16.mxu0 %vm1458_vm4, %v2220_v27 }
  0xe9   : > { %v2140_v42 = vpop.permute.xlu0 %2139 }
  0xea   : > { %v2204_v48 = vsel %vm810_vm3, %v2172_v57, %v2140_v42  ;;  %v643_v24 = vpop.permute.xlu1 %642 }
  0xeb   : > { %v2240_v35 = vsel %vm1458_vm4, %v2204_v48, 0  ;;  %v805_v37 = vsel %vm777_vm2, %v3461_v39, %v643_v24  ;;  %v4222_v48 = vld [vmem:[#allocation8_spill] sm:$0xff] }
  0xec   : > { %2803 = vmatpush3.bf16.xpose.msra.mxu0 %v2240_v35 }
  0xed   : > { %v627_v54 = vpop.permute.xlu0 %626 }
  0xee   : > { %v772_v23 = vpop.permute.xlu1 %771  ;;  %v789_v59 = vsel %vm777_vm2, %v3477_v6, %v627_v54 }
  0xef   : > { %v838_v53 = vsel %vm810_vm3, %v805_v37, %v772_v23 }
  0xf0   : > { %2828 = vmatprep.subr.msk.bf16.mxu1 %vm1458_vm4, %v838_v53 }
  0xf1   : > { %v756_v30 = vpop.permute.xlu0 %755 }
  0xf2   : > { %v822_v21 = vsel %vm810_vm3, %v789_v59, %v756_v30  ;;  %v2026_v5 = vpop.permute.xlu1 %2025 }
  0xf3   : > { %v1548_v17 = vsel %vm1458_vm4, %v822_v21, 0  ;;  %v2186_v15 = vsel %vm777_vm2, %v3504_v4, %v2026_v5 }
  0xf4   : > { %2787 = vmatpush3.bf16.xpose.msra.mxu1 %v1548_v17 }
  0xf5   : > { %v2010_v47 = vpop.permute.xlu0 %2009 }
  0xf6   : > { %v2154_v39 = vpop.permute.xlu1 %2153  ;;  %v2170_v29 = vsel %vm777_vm2, %v3514_v11, %v2010_v47 }
  0xf7   : > { %v2218_v14 = vsel %vm810_vm3, %v2186_v15, %v2154_v39 }
  0xf8   : > { %2836 = vmatprep.subr.msk.bf16.mxu0 %vm1458_vm4, %v2218_v14 }
  0xf9   : > { %v2138_v6 = vpop.permute.xlu0 %2137 }
  0xfa   : > { %v2202_v9 = vsel %vm810_vm3, %v2170_v29, %v2138_v6  ;;  %v641_v33 = vpop.permute.xlu1 %640 }
  0xfb   : > { %v2238_v55 = vsel %vm1458_vm4, %v2202_v9, 0  ;;  %v803_v12 = vsel %vm777_vm2, %v4217_v1, %v641_v33 }
  0xfc   : > { %2805 = vmatpush3.bf16.xpose.msra.mxu0 %v2238_v55 }
  0xfd   : > { %v625_v32 = vpop.permute.xlu0 %624 }
  0xfe   : > { %v770_v4 = vpop.permute.xlu1 %769  ;;  %v787_v40 = vsel %vm777_vm2, %v4218_v58, %v625_v32 }
  0xff   : > { %v836_v49 = vsel %vm810_vm3, %v803_v12, %v770_v4 }
 0x100   : > { %2829 = vmatprep.subr.msk.bf16.mxu1 %vm1458_vm4, %v836_v49 }
 0x101   : > { %v754_v11 = vpop.permute.xlu0 %753 }
 0x102   : > { %v820_v0 = vsel %vm810_vm3, %v787_v40, %v754_v11  ;;  %v2024_v46 = vpop.permute.xlu1 %2023 }
 0x103   : > { %v1546_v8 = vsel %vm1458_vm4, %v820_v0, 0  ;;  %v2184_v16 = vsel %vm777_vm2, %v4219_v44, %v2024_v46 }
 0x104   : > { %2789 = vmatpush3.bf16.xpose.msra.mxu1 %v1546_v8 }
 0x105   : > { %v2008_v41 = vpop.permute.xlu0 %2007 }
 0x106   : > { %v2152_v36 = vpop.permute.xlu1 %2151  ;;  %v2168_v18 = vsel %vm777_vm2, %v4220_v2, %v2008_v41 }
 0x107   : > { %v2216_v34 = vsel %vm810_vm3, %v2184_v16, %v2152_v36 }
 0x108   : > { %2837 = vmatprep.subr.msk.bf16.mxu0 %vm1458_vm4, %v2216_v34 }
 0x109   : > { %v2136_v50 = vpop.permute.xlu0 %2135 }
 0x10a   : > { %v2200_v63 = vsel %vm810_vm3, %v2168_v18, %v2136_v50  ;;  %v639_v19 = vpop.permute.xlu1 %638 }
 0x10b   : > { %v2236_v38 = vsel %vm1458_vm4, %v2200_v63, 0  ;;  %v801_v27 = vsel %vm777_vm2, %v4221_v31, %v639_v19 }
 0x10c   : > { %2807 = vmatpush3.bf16.xpose.msra.mxu0 %v2236_v38 }
 0x10d   : > { %v623_v51 = vpop.permute.xlu0 %622 }
 0x10e   : > { %v768_v57 = vpop.permute.xlu1 %767  ;;  %v785_v35 = vsel %vm777_vm2, %v4222_v48, %v623_v51 }
 0x10f   : > { %v834_v42 = vsel %vm810_vm3, %v801_v27, %v768_v57 }
 0x110   : > { %2830 = vmatprep.subr.msk.bf16.mxu1 %vm1458_vm4, %v834_v42 }
 0x111   : > { %v752_v24 = vpop.permute.xlu0 %751 }
 0x112   : > { %v818_v54 = vsel %vm810_vm3, %v785_v35, %v752_v24  ;;  %v2022_v23 = vpop.permute.xlu1 %2021 }
 0x113   : > { %v1544_v37 = vsel %vm1458_vm4, %v818_v54, 0  ;;  %v2182_v59 = vsel %vm777_vm2, %v3673_v26, %v2022_v23 }
 0x114   : > { %2791 = vmatpush3.bf16.xpose.msra.mxu1 %v1544_v37 }
 0x115   : > { %v2006_v53 = vpop.permute.xlu0 %2005 }
 0x116   : > { %v2150_v30 = vpop.permute.xlu1 %2149  ;;  %v2166_v17 = vsel %vm777_vm2, %v3678_v45, %v2006_v53 }
 0x117   : > { %v2214_v21 = vsel %vm810_vm3, %v2182_v59, %v2150_v30 }
 0x118   : > { %2838 = vmatprep.subr.msk.bf16.mxu0 %vm1458_vm4, %v2214_v21 }
 0x119   : > { %v2134_v5 = vpop.permute.xlu0 %2133 }
 0x11a   : > { %v2198_v47 = vsel %vm810_vm3, %v2166_v17, %v2134_v5  ;;  %v637_v39 = vpop.permute.xlu1 %636 }
 0x11b   : > { %v2234_v15 = vsel %vm1458_vm4, %v2198_v47, 0  ;;  %v799_v29 = vsel %vm777_vm2, %v3717_v25, %v637_v39 }
 0x11c   : > { %2809 = vmatpush3.bf16.xpose.msra.mxu0 %v2234_v15 }
 0x11d   : > { %v621_v14 = vpop.permute.xlu0 %620 }
 0x11e   : > { %v766_v26 = vpop.permute.xlu1 %765  ;;  %v783_v9 = vsel %vm777_vm2, %v3730_v20, %v621_v14 }
 0x11f   : > { %v832_v6 = vsel %vm810_vm3, %v799_v29, %v766_v26 }
 0x120   : > { %2831 = vmatprep.subr.msk.bf16.mxu1 %vm1458_vm4, %v832_v6 }
 0x121   : > { %v750_v45 = vpop.permute.xlu0 %749 }
 0x122   : > { %v816_v55 = vsel %vm810_vm3, %v783_v9, %v750_v45  ;;  %v2020_v32 = vpop.permute.xlu1 %2019 }
 0x123   : > { %v1542_v33 = vsel %vm1458_vm4, %v816_v55, 0  ;;  %v2180_v12 = vsel %vm777_vm2, %v3764_v22, %v2020_v32 }
 0x124   : > { %2793 = vmatpush3.bf16.xpose.msra.mxu1 %v1542_v33 }
 0x125   : > { %v2004_v1 = vpop.permute.xlu0 %2003 }
 0x126   : > { %v2148_v25 = vpop.permute.xlu1 %2147  ;;  %v2164_v49 = vsel %vm777_vm2, %v3776_v13, %v2004_v1 }
 0x127   : > { %v2212_v4 = vsel %vm810_vm3, %v2180_v12, %v2148_v25 }
 0x128   : > { %2839 = vmatprep.subr.msk.bf16.mxu0 %vm1458_vm4, %v2212_v4 }
 0x129   : > { %v2132_v20 = vpop.permute.xlu0 %2131 }
 0x12a   : > { %v2196_v58 = vsel %vm810_vm3, %v2164_v49, %v2132_v20  ;;  %v635_v11 = vpop.permute.xlu1 %634  ;;  %v3046_v49 = vmov 0  }
 0x12b   : > { %v2232_v40 = vsel %vm1458_vm4, %v2196_v58, 0  ;;  %v797_v8 = vsel %vm777_vm2, %v3814_v10, %v635_v11  ;;  %2872 = vset.pattern.permute.xlu1 %v3046_v49  ;;  %v3047_v11 = vmov 1  }
 0x12c   : > { %2811 = vmatpush3.bf16.xpose.msra.mxu0 %v2232_v40  ;;  %2873 = vset.pattern.permute.xlu0 %v3047_v11 }
 0x12d   : > { %v619_v0 = vpop.permute.xlu0 %618 }
 0x12e   : > { %v764_v22 = vpop.permute.xlu1 %763  ;;  %v781_v41 = vsel %vm777_vm2, %v3818_v62, %v619_v0  ;;  %v2323_v0 = vld [vmem:[%s4203_s2] sm:$0xff] }
 0x12f   : > { %v830_v46 = vsel %vm810_vm3, %v797_v8, %v764_v22 }
 0x130   : > { %2832 = vmatprep.subr.msk.bf16.mxu1 %vm1458_vm4, %v830_v46 }
 0x131   : > { %v748_v13 = vpop.permute.xlu0 %747 }
 0x132   : > { %v814_v44 = vsel %vm810_vm3, %v781_v41, %v748_v13  ;;  %v2018_v36 = vpop.permute.xlu1 %2017 }
 0x133   : > { %v1540_v16 = vsel %vm1458_vm4, %v814_v44, 0  ;;  %v2178_v2 = vsel %vm777_vm2, %v3865_v3, %v2018_v36 }
 0x134   : > { %2795 = vmatpush3.bf16.xpose.msra.mxu1 %v1540_v16 }
 0x135   : > { %v2002_v34 = vpop.permute.xlu0 %2001 }
 0x136   : > { %v2146_v10 = vpop.permute.xlu1 %2145  ;;  %v2162_v50 = vsel %vm777_vm2, %v3883_v60, %v2002_v34 }
 0x137   : > { %v2210_v18 = vsel %vm810_vm3, %v2178_v2, %v2146_v10 }
 0x138   : > { %2840 = vmatprep.subr.msk.bf16.mxu0 %vm1458_vm4, %v2210_v18 }
 0x139   : > { %v2130_v62 = vpop.permute.xlu0 %2129 }
 0x13a   : > { %v2194_v63 = vsel %vm810_vm3, %v2162_v50, %v2130_v62  ;;  %v633_v19 = vpop.permute.xlu1 %632 }
 0x13b   : > { %v2230_v38 = vsel %vm1458_vm4, %v2194_v63, 0  ;;  %v795_v31 = vsel %vm777_vm2, %v3920_v43, %v633_v19 }
 0x13c   : > { %2813 = vmatpush3.bf16.xpose.msra.mxu0 %v2230_v38 }
 0x13d   : > { %v617_v51 = vpop.permute.xlu0 %616 }
 0x13e   : > { %v762_v3 = vpop.permute.xlu1 %761  ;;  %v779_v57 = vsel %vm777_vm2, %v3928_v7, %v617_v51 }
 0x13f   : > { %v828_v27 = vsel %vm810_vm3, %v795_v31, %v762_v3 }
 0x140   : > { %2833 = vmatprep.subr.msk.bf16.mxu1 %vm1458_vm4, %v828_v27 }
 0x141   : > { %v746_v60 = vpop.permute.xlu0 %745 }
 0x142   : > { %v812_v42 = vsel %vm810_vm3, %v779_v57, %v746_v60  ;;  %v2016_v35 = vpop.permute.xlu1 %2015 }
 0x143   : > { %v1538_v48 = vsel %vm1458_vm4, %v812_v42, 0  ;;  %v2176_v54 = vsel %vm777_vm2, %v3972_v56, %v2016_v35 }
 0x144   : > { %2797 = vmatpush3.bf16.xpose.msra.mxu1 %v1538_v48 }
 0x145   : > { %v2000_v24 = vpop.permute.xlu0 %1999 }
 0x146   : > { %v2144_v43 = vpop.permute.xlu1 %2143  ;;  %v2160_v37 = vsel %vm777_vm2, %v3978_v61, %v2000_v24 }
 0x147   : > { %v2208_v23 = vsel %vm810_vm3, %v2176_v54, %v2144_v43 }
 0x148   : > { %2841 = vmatprep.subr.msk.bf16.mxu0 %vm1458_vm4, %v2208_v23 }
 0x149   : > { %v2128_v7 = vpop.permute.xlu0 %2127 }
 0x14a   : > { %v2192_v53 = vsel %vm810_vm3, %v2160_v37, %v2128_v7 }
 0x14b   : > { %v2228_v59 = vsel %vm1458_vm4, %v2192_v53, 0  ;;  %2799 = vmatmul.mubr.msk.bf16.vlgmr.msra.gmra.mxu1 %vm1458_vm4, %v4018_v52 }
 0x14c   : > { %2815 = vmatpush3.bf16.xpose.msra.mxu0 %v2228_v59 }
 0x153   : > { %2817 = vmatmul.mubr.msk.bf16.vlgmr.msra.gmra.mxu0 %vm1458_vm4, %v4054_v28 }
 0x198   : > { %v1528_v56 = vpop.f32.mrf.mxu0 }
 0x19a   : > { %v1530_v30 = vpop.f32.mrf.mxu0 }
 0x19c   : > { %v1532_v21 = vpop.f32.mrf.mxu0 }
 0x19e   : > { %v1533_v61 = vpop.f32.mrf.mxu0 }
 0x20b   : > { %v1604_v17 = vpop.f32.mrf.mxu1 }
 0x20c   : > { %v1605_v14 = vadd.f32 %v1604_v17, %v1528_v56 }
 0x20d   : > { %v1606_v5 = vpop.f32.mrf.mxu1 }
 0x20e   : > { %v1607_v29 = vadd.f32 %v1606_v5, %v1530_v30 }
 0x20f   : > { %v1608_v47 = vpop.f32.mrf.mxu1 }
 0x211   : > { %v1609_v15 = vpop.f32.mrf.mxu1 }
 0x213   : > { %v2294_v39 = vpop.f32.mrf.mxu0 }
 0x214   : > { %v2301_v6 = vadd.f32 %v2294_v39, %v1605_v14 }
 0x215   : > { %v2296_v26 = vpop.f32.mrf.mxu0 }
 0x216   : > { %v2302_v9 = vadd.f32 %v2296_v26, %v1607_v29 }
 0x217   : > { %v2298_v45 = vpop.f32.mrf.mxu0 }
 0x218   : > { %v2305_v52 = vadd.f32 %v2302_v9, %v2301_v6 }
 0x219   : > { %v2299_v55 = vpop.f32.mrf.mxu0 }
 0x21a   : > { %2306 = vadd.xlane.f32.xlu0 %v2305_v52 }
 0x2a3   : > { %v2307_v33 = vpop.xlane.xlu0 %2306 }
 0x2a4   : > { %v2309_v28 = vmul.f32 0.00390625, %v2307_v33 }
 0x2a6   : > { %v2312_v32 = vsub.f32 %v2301_v6, %v2309_v28  ;;  %v2313_v1 = vsub.f32 %v2302_v9, %v2309_v28 }
 0x2a8   : > { %v2314_v12 = vmul.f32 %v2312_v32, %v2312_v32  ;;  %v2315_v25 = vmul.f32 %v2313_v1, %v2313_v1 }
 0x2aa   : > { %v2316_v4 = vadd.f32 %v2315_v25, %v2314_v12 }
 0x2ac   : > { %2317 = vadd.xlane.f32.xlu1 %v2316_v4 }
 0x335   : > { %v2318_v20 = vpop.xlane.xlu1 %2317 }
 0x336   : > { %v2320_v58 = vmul.f32 0.00390625, %v2318_v20 }
 0x338   : > { %v2321_v40 = vadd.f32 1e-05, %v2320_v58 }
 0x33a   : > { %3018 = vrsqrt.f32 %v2321_v40 }
 0x347   : > { %v3019_v8 = vpop.eup %3018 }
 0x348   : > { %v2324_v22 = vmul.f32 %v3019_v8, %v2323_v0 }
 0x34a   : > { %2333 = vperm.xlu1 %2872, %v2324_v22   ;;  %v2325_v46 = vmul.f32 %v2324_v22, %v2309_v28 }
 0x34c   : > { %2327 = vrot.lane.b32.xlu0 %v2325_v46, %s3048_s30 }
 0x3be   : > { %v2328_v41 = vpop.permute.xlu0 %2327 }
 0x3bf   : > { %v2330_v13 = vsub.f32 %v2323_v0, %v2328_v41 }
 0x3c1   : > { %2340 = vperm.xlu0 %2873, %v2330_v13  }
 0x3c5   : > { %v2334_v44 = vpop.permute.xlu1 %2333 }
 0x3c6   : > { %v2336_v16 = vmul.f32 %v2334_v44, %v2301_v6  ;;  %v2337_v36 = vmul.f32 %v2334_v44, %v2302_v9 }
 0x43c   : > { %v2341_v34 = vpop.permute.xlu0 %2340 }
 0x43d   : > { %v2343_v2 = vadd.f32 %v2341_v34, %v2336_v16  ;;  %v2344_v10 = vadd.f32 %v2341_v34, %v2337_v36 }
 0x43f   : > { %v2345_v18 = vmax.f32 %v2343_v2, 0.0  ;;  %v2346_v50 = vmax.f32 %v2344_v10, 0.0 }
 0x441   : > { %v2763_v62 = vpack.c.bf16 %v2346_v50, %v2345_v18 }
 0x443   : > { %2355 = vst [vmem:[%s226_s7] sm:$0xff] %v2763_v62 }
 0x444 PF: > { %s13_s14 = sadd.s32 1, %s3042_s14   ;;  %s4223_s12 = smov %s3038_s13 }
 0x445   : > { %p10_p5 = scmp.ge.s32.totalorder %s13_s14, 4   ;;  %s4224_s13 = smov %s4226_s15 }
 0x447   :  { %12 = sbr.rel (!%p10_p5) target bundleno = 2 (0x2), region = 73 }

</bundles_post_ra>
